<compile_context>
chip_gen: v6e
topology: v6e:2x2x1
jax: 0.10.0
libtpu: 0.0.40
codegen_flags: <defaults>
</compile_context>

<pallas_src>
import math

import jax
import jax.numpy as jnp
from jax import lax
from jax.experimental import pallas as pl
from jax.experimental.pallas import tpu as pltpu


def _make_kernel(num_heads, emb_dim, n_true, n_pad):
    """Build the per-batch kernel (all heads handled inside one grid step)."""
    he = num_heads * emb_dim

    def kernel(x_ref, wqkv_ref, wo_ref, bo_ref, o_ref):
        # x_ref   : (1, Cp, Np)  bf16 augmented input (C + coords + ones)
        # wqkv_ref: (3*nh*E, Cp) bf16 fused q/k/v weights (biases folded,
        #                        1/sqrt(E) folded into the q rows)
        # wo_ref  : (C, nh*E)    bf16 out_emb 1x1-conv weight
        # bo_ref  : (C, 1)       f32  out_emb bias
        # o_ref   : (1, C, Np)   f32  output (written once)
        x = x_ref[0]                                                  # (Cp, Np)

        # Fused QKV projection: one MXU matmul, M = 3*nh*E rows.
        qkv = jnp.dot(wqkv_ref[...], x,
                      preferred_element_type=jnp.float32)             # (3he, Np)

        if n_pad > n_true:
            # Padded query positions (rows, PyTorch softmax dim=-2) must not
            # contribute to the softmax of any real column.
            row_ids = lax.broadcasted_iota(jnp.int32, (n_pad, n_pad), 0)
            pad_mask = row_ids < n_true

        head_outs = []
        for h in range(num_heads):  # small, static head count -> unrolled
            q = qkv[h * emb_dim:(h + 1) * emb_dim].astype(jnp.bfloat16)
            k = qkv[he + h * emb_dim:he + (h + 1) * emb_dim].astype(jnp.bfloat16)
            v = qkv[2 * he + h * emb_dim:
                    2 * he + (h + 1) * emb_dim].astype(jnp.bfloat16)

            # att[i, j] = sum_d q[d, i] * k[d, j]   (scale already folded in)
            att = lax.dot_general(q, k, (((0,), (0,)), ((), ())),
                                  preferred_element_type=jnp.float32)  # (Np,Np)
            if n_pad > n_true:
                att = jnp.where(pad_mask, att, -1e30)

            # Softmax over axis 0 (== PyTorch dim=-2), normalization deferred.
            att = att - jnp.max(att, axis=0, keepdims=True)
            p = jnp.exp(att)
            denom = jnp.sum(p, axis=0, keepdims=True)                  # (1, Np)

            head_out = jnp.dot(v, p.astype(jnp.bfloat16),
                               preferred_element_type=jnp.float32)     # (E, Np)
            head_out = head_out * pl.reciprocal(denom, approx=True)
            head_outs.append(head_out.astype(jnp.bfloat16))

        stacked = jnp.concatenate(head_outs, axis=0)                   # (he, Np)
        out = jnp.dot(wo_ref[...], stacked,
                      preferred_element_type=jnp.float32)              # (C, Np)
        o_ref[0] = (out + bo_ref[...]).astype(o_ref.dtype)

    return kernel


def _coord_channels(batch, nrows, ncols, dtype=jnp.float32):
    rows = jnp.broadcast_to(jnp.arange(nrows, dtype=dtype)[:, None],
                            (nrows, ncols))
    cols = jnp.broadcast_to(jnp.arange(ncols, dtype=dtype)[None, :],
                            (nrows, ncols))
    coords = jnp.stack([rows, cols], axis=0)                           # (2,H,W)
    return jnp.broadcast_to(coords[None], (batch, 2, nrows, ncols))


def _vmem_bytes_estimate(cp, c, nh, e, n_pad):
    bf16, f32 = 2, 4
    he = nh * e
    blocks = 2 * (cp * n_pad * bf16        # x block, double-buffered
                  + 3 * he * cp * bf16     # wqkv
                  + c * he * bf16          # wo
                  + c * 1 * f32            # bo
                  + c * n_pad * f32)       # output block
    temps = (3 * he * n_pad * f32          # qkv
             + 3 * n_pad * n_pad * f32     # att / p / mask temporaries
             + he * n_pad * (f32 + bf16)   # head outputs
             + c * n_pad * f32)            # projected output
    return blocks + temps


def self_attention_2d(x, params, *, num_heads, emb_dim, enc_norm):
    """Pallas implementation of SelfAttention2d.forward. x: NCHW float32."""
    B, C, H, W = x.shape
    N = H * W
    n_pad = ((N + 127) // 128) * 128      # lane-dense output / clean MXU tiles
    Cp = C + 3                            # +2 coord channels, +1 ones (biases)
    he = num_heads * emb_dim

    coords = _coord_channels(B, H, W) / float(enc_norm)
    ones = jnp.ones((B, 1, H, W), jnp.float32)
    x_aug = jnp.concatenate([x, coords, ones], axis=1).reshape(B, Cp, N)
    if n_pad != N:
        x_aug = jnp.pad(x_aug, ((0, 0), (0, 0), (0, n_pad - N)))
    x_aug = x_aug.astype(jnp.bfloat16)

    def fold(w, b, scale=1.0):
        # w: (he, C+2), b: (he,) -> (he, Cp) with bias as an extra column.
        return jnp.concatenate([w, b[:, None]], axis=1) * scale

    inv_sqrt_e = 1.0 / math.sqrt(emb_dim)
    wq = fold(params["wq"], params["bq"], inv_sqrt_e)   # scale folded into q
    wk = fold(params["wk"], params["bk"])
    wv = fold(params["wv"], params["bv"])
    wqkv = jnp.concatenate([wq, wk, wv], axis=0).astype(jnp.bfloat16)  # (3he,Cp)
    wo = params["wo"].astype(jnp.bfloat16)                             # (C, he)
    bo = params["bo"][:, None].astype(jnp.float32)                     # (C, 1)

    kernel = _make_kernel(num_heads, emb_dim, N, n_pad)

    flops = int(B * (2 * 3 * he * Cp * n_pad                 # fused QKV proj
                     + num_heads * 4 * emb_dim * n_pad * n_pad  # scores + v@p
                     + 2 * C * he * n_pad))                   # out projection
    transcendentals = int(B * num_heads * n_pad * n_pad)      # exp
    bytes_accessed = int(x_aug.size * 2 + wqkv.size * 2 + wo.size * 2
                         + bo.size * 4 + B * C * n_pad * 4)
    cost = pl.CostEstimate(flops=flops, transcendentals=transcendentals,
                           bytes_accessed=bytes_accessed)

    est = _vmem_bytes_estimate(Cp, C, num_heads, emb_dim, n_pad)
    vmem_limit = int(min(max(2 * est, 32 << 20), 64 << 20))

    out = pl.pallas_call(
        kernel,
        out_shape=jax.ShapeDtypeStruct((B, C, n_pad), jnp.float32),
        grid=(B,),
        in_specs=[
            pl.BlockSpec((1, Cp, n_pad), lambda b: (b, 0, 0)),
            pl.BlockSpec((3 * he, Cp), lambda b: (0, 0)),
            pl.BlockSpec((C, he), lambda b: (0, 0)),
            pl.BlockSpec((C, 1), lambda b: (0, 0)),
        ],
        out_specs=pl.BlockSpec((1, C, n_pad), lambda b: (b, 0, 0)),
        compiler_params=pltpu.CompilerParams(
            dimension_semantics=("parallel",),
            vmem_limit_bytes=vmem_limit),
        cost_estimate=cost,
    )(x_aug, wqkv, wo, bo)

    return out[:, :, :N].reshape(B, C, H, W)


def reference(x, params, *, num_heads, emb_dim, enc_norm):
    """Pure-JAX (f32) transcription of the PyTorch forward, for verification."""
    B, C, H, W = x.shape
    inp = jnp.concatenate([x, _coord_channels(B, H, W) / float(enc_norm)],
                          axis=1)                                   # (B,C+2,H,W)

    def conv1x1(t, w, b):
        return jnp.einsum("oc,bchw->bohw", w, t) + b[None, :, None, None]

    q = conv1x1(inp, params["wq"], params["bq"]).reshape(B, num_heads, emb_dim, -1)
    k = conv1x1(inp, params["wk"], params["bk"]).reshape(B, num_heads, emb_dim, -1)
    v = conv1x1(inp, params["wv"], params["bv"]).reshape(B, num_heads, emb_dim, -1)

    att = jnp.einsum("bhdn,bhdm->bhnm", q, k) / math.sqrt(emb_dim)
    att = jax.nn.softmax(att, axis=-2)
    out = jnp.einsum("bhdn,bhnm->bhdm", v, att).reshape(
        B, num_heads * emb_dim, H, W)
    return conv1x1(out, params["wo"], params["bo"])


def init_params(key, in_channels, num_heads, emb_dim):
    """Deterministic synthetic parameters (1x1 conv kernels stored as 2-D)."""
    he = num_heads * emb_dim
    cin = in_channels + 2
    ks = jax.random.split(key, 8)
    s_in = 1.0 / math.sqrt(cin)
    s_out = 1.0 / math.sqrt(he)
    return {
        "wq": jax.random.normal(ks[0], (he, cin), jnp.float32) * s_in,
        "bq": jax.random.normal(ks[1], (he,), jnp.float32) * s_in,
        "wk": jax.random.normal(ks[2], (he, cin), jnp.float32) * s_in,
        "bk": jax.random.normal(ks[3], (he,), jnp.float32) * s_in,
        "wv": jax.random.normal(ks[4], (he, cin), jnp.float32) * s_in,
        "bv": jax.random.normal(ks[5], (he,), jnp.float32) * s_in,
        "wo": jax.random.normal(ks[6], (in_channels, he), jnp.float32) * s_out,
        "bo": jax.random.normal(ks[7], (in_channels,), jnp.float32) * s_out,
    }


if __name__ == "__main__":
    in_channels, num_heads, emb_dim, enc_norm = 4, 2, 8, 16
    B, H, W = 2, 16, 16

    key = jax.random.PRNGKey(0)
    kx, kp = jax.random.split(key)
    x = jax.random.normal(kx, (B, in_channels, H, W), jnp.float32)
    params = init_params(kp, in_channels, num_heads, emb_dim)

    out = self_attention_2d(x, params, num_heads=num_heads,
                            emb_dim=emb_dim, enc_norm=enc_norm)
    out = jax.block_until_ready(out)

    ref = reference(x, params, num_heads=num_heads,
                    emb_dim=emb_dim, enc_norm=enc_norm)
    assert out.shape == (B, in_channels, H, W)
    # Tolerance relaxed vs. the f32 reference because the kernel uses bf16
    # MXU operands (per the performance review); structural bugs would show
    # as O(1) errors, far above this bound.
    assert jnp.allclose(out, ref, rtol=1e-1, atol=1e-1), (
        float(jnp.max(jnp.abs(out - ref))))

    print("KERNEL_OK")
</pallas_src>

<mosaic_0001>
module attributes {stable_mosaic.version = 11 : i64} {
  func.func @kernel(%arg0: i32, %arg1: memref<1x7x256xbf16, #tpu.memory_space<vmem>>, %arg2: memref<48x7xbf16, #tpu.memory_space<vmem>>, %arg3: memref<4x16xbf16, #tpu.memory_space<vmem>>, %arg4: memref<4x1xf32, #tpu.memory_space<vmem>>, %arg5: memref<1x4x256xf32, #tpu.memory_space<vmem>>) attributes {dimension_semantics = [#tpu.dimension_semantics<parallel>], iteration_bounds = array<i64: 2>, scalar_prefetch = 0 : i64, scratch_operands = 0 : i64, tpu.core_type = #tpu.core_type<tc>, window_params = [{transform_indices = @transform_0, window_bounds = array<i64: 1, 7, 256>}, {pipeline_mode = #tpu.pipeline_mode<synchronous>, transform_indices = @transform_1, window_bounds = array<i64: 48, 7>}, {pipeline_mode = #tpu.pipeline_mode<synchronous>, transform_indices = @transform_2, window_bounds = array<i64: 4, 16>}, {pipeline_mode = #tpu.pipeline_mode<synchronous>, transform_indices = @transform_3, window_bounds = array<i64: 4, 1>}, {transform_indices = @transform_4, window_bounds = array<i64: 1, 4, 256>}]} {
    %c0 = arith.constant 0 : index
    %c0_0 = arith.constant 0 : index
    %c0_1 = arith.constant 0 : index
    %0 = vector.load %arg1[%c0, %c0_0, %c0_1] : memref<1x7x256xbf16, #tpu.memory_space<vmem>>, vector<1x7x256xbf16>
    %1 = vector.shape_cast %0 : vector<1x7x256xbf16> to vector<7x256xbf16>
    %c0_2 = arith.constant 0 : index
    %c0_3 = arith.constant 0 : index
    %2 = vector.load %arg2[%c0_2, %c0_3] : memref<48x7xbf16, #tpu.memory_space<vmem>>, vector<48x7xbf16>
    %cst = arith.constant dense<0.000000e+00> : vector<48x256xf32>
    %3 = tpu.matmul %2, %1, %cst {dimension_numbers = #tpu.dot_dimension_numbers<[1], [0], [0], [1], [0, 0, 1, 1], [], []>} : vector<48x7xbf16>, vector<7x256xbf16>, vector<48x256xf32> -> vector<48x256xf32>
    %4 = vector.extract_strided_slice %3 {offsets = [0, 0], sizes = [8, 256], strides = [1, 1]} : vector<48x256xf32> to vector<8x256xf32>
    %5 = arith.truncf %4 : vector<8x256xf32> to vector<8x256xbf16>
    %6 = vector.extract_strided_slice %3 {offsets = [16, 0], sizes = [8, 256], strides = [1, 1]} : vector<48x256xf32> to vector<8x256xf32>
    %7 = arith.truncf %6 : vector<8x256xf32> to vector<8x256xbf16>
    %8 = vector.extract_strided_slice %3 {offsets = [32, 0], sizes = [8, 256], strides = [1, 1]} : vector<48x256xf32> to vector<8x256xf32>
    %9 = arith.truncf %8 : vector<8x256xf32> to vector<8x256xbf16>
    %cst_4 = arith.constant dense<0.000000e+00> : vector<256x256xf32>
    %10 = tpu.matmul %5, %7, %cst_4 {dimension_numbers = #tpu.dot_dimension_numbers<[0], [0], [1], [1], [0, 1, 1, 1], [], []>} : vector<8x256xbf16>, vector<8x256xbf16>, vector<256x256xf32> -> vector<256x256xf32>
    %cst_5 = arith.constant dense<0xFF800000> : vector<256xf32>
    %11 = vector.multi_reduction <maximumf>, %10, %cst_5 [0] : vector<256x256xf32> to vector<256xf32>
    %12 = vector.shape_cast %11 : vector<256xf32> to vector<1x256xf32>
    %13 = vector.broadcast %12 : vector<1x256xf32> to vector<256x256xf32>
    %14 = arith.subf %10, %13 : vector<256x256xf32>
    %15 = math.exp %14 : vector<256x256xf32>
    %cst_6 = arith.constant dense<0.000000e+00> : vector<256xf32>
    %16 = vector.multi_reduction <add>, %15, %cst_6 [0] : vector<256x256xf32> to vector<256xf32>
    %17 = vector.shape_cast %16 : vector<256xf32> to vector<1x256xf32>
    %18 = arith.truncf %15 : vector<256x256xf32> to vector<256x256xbf16>
    %cst_7 = arith.constant dense<0.000000e+00> : vector<8x256xf32>
    %19 = tpu.matmul %9, %18, %cst_7 {dimension_numbers = #tpu.dot_dimension_numbers<[1], [0], [0], [1], [0, 0, 1, 1], [], []>} : vector<8x256xbf16>, vector<256x256xbf16>, vector<8x256xf32> -> vector<8x256xf32>
    %20 = tpu.reciprocal %17 {approx = true} : vector<1x256xf32> -> vector<1x256xf32>
    %21 = vector.broadcast %20 : vector<1x256xf32> to vector<8x256xf32>
    %22 = arith.mulf %19, %21 : vector<8x256xf32>
    %23 = arith.truncf %22 : vector<8x256xf32> to vector<8x256xbf16>
    %24 = vector.extract_strided_slice %3 {offsets = [8, 0], sizes = [8, 256], strides = [1, 1]} : vector<48x256xf32> to vector<8x256xf32>
    %25 = arith.truncf %24 : vector<8x256xf32> to vector<8x256xbf16>
    %26 = vector.extract_strided_slice %3 {offsets = [24, 0], sizes = [8, 256], strides = [1, 1]} : vector<48x256xf32> to vector<8x256xf32>
    %27 = arith.truncf %26 : vector<8x256xf32> to vector<8x256xbf16>
    %28 = vector.extract_strided_slice %3 {offsets = [40, 0], sizes = [8, 256], strides = [1, 1]} : vector<48x256xf32> to vector<8x256xf32>
    %29 = arith.truncf %28 : vector<8x256xf32> to vector<8x256xbf16>
    %cst_8 = arith.constant dense<0.000000e+00> : vector<256x256xf32>
    %30 = tpu.matmul %25, %27, %cst_8 {dimension_numbers = #tpu.dot_dimension_numbers<[0], [0], [1], [1], [0, 1, 1, 1], [], []>} : vector<8x256xbf16>, vector<8x256xbf16>, vector<256x256xf32> -> vector<256x256xf32>
    %cst_9 = arith.constant dense<0xFF800000> : vector<256xf32>
    %31 = vector.multi_reduction <maximumf>, %30, %cst_9 [0] : vector<256x256xf32> to vector<256xf32>
    %32 = vector.shape_cast %31 : vector<256xf32> to vector<1x256xf32>
    %33 = vector.broadcast %32 : vector<1x256xf32> to vector<256x256xf32>
    %34 = arith.subf %30, %33 : vector<256x256xf32>
    %35 = math.exp %34 : vector<256x256xf32>
    %cst_10 = arith.constant dense<0.000000e+00> : vector<256xf32>
    %36 = vector.multi_reduction <add>, %35, %cst_10 [0] : vector<256x256xf32> to vector<256xf32>
    %37 = vector.shape_cast %36 : vector<256xf32> to vector<1x256xf32>
    %38 = arith.truncf %35 : vector<256x256xf32> to vector<256x256xbf16>
    %cst_11 = arith.constant dense<0.000000e+00> : vector<8x256xf32>
    %39 = tpu.matmul %29, %38, %cst_11 {dimension_numbers = #tpu.dot_dimension_numbers<[1], [0], [0], [1], [0, 0, 1, 1], [], []>} : vector<8x256xbf16>, vector<256x256xbf16>, vector<8x256xf32> -> vector<8x256xf32>
    %40 = tpu.reciprocal %37 {approx = true} : vector<1x256xf32> -> vector<1x256xf32>
    %41 = vector.broadcast %40 : vector<1x256xf32> to vector<8x256xf32>
    %42 = arith.mulf %39, %41 : vector<8x256xf32>
    %43 = arith.truncf %42 : vector<8x256xf32> to vector<8x256xbf16>
    %44 = tpu.concatenate %23, %43 in 0 : vector<8x256xbf16>, vector<8x256xbf16> -> vector<16x256xbf16>
    %c0_12 = arith.constant 0 : index
    %c0_13 = arith.constant 0 : index
    %45 = vector.load %arg3[%c0_12, %c0_13] : memref<4x16xbf16, #tpu.memory_space<vmem>>, vector<4x16xbf16>
    %cst_14 = arith.constant dense<0.000000e+00> : vector<4x256xf32>
    %46 = tpu.matmul %45, %44, %cst_14 {dimension_numbers = #tpu.dot_dimension_numbers<[1], [0], [0], [1], [0, 0, 1, 1], [], []>} : vector<4x16xbf16>, vector<16x256xbf16>, vector<4x256xf32> -> vector<4x256xf32>
    %c0_15 = arith.constant 0 : index
    %c0_16 = arith.constant 0 : index
    %47 = vector.load %arg4[%c0_15, %c0_16] : memref<4x1xf32, #tpu.memory_space<vmem>>, vector<4x1xf32>
    %48 = vector.broadcast %47 : vector<4x1xf32> to vector<4x256xf32>
    %49 = arith.addf %46, %48 : vector<4x256xf32>
    %c0_17 = arith.constant 0 : index
    %c0_18 = arith.constant 0 : index
    %c0_19 = arith.constant 0 : index
    %50 = vector.load %arg5[%c0_17, %c0_18, %c0_19] : memref<1x4x256xf32, #tpu.memory_space<vmem>>, vector<1x4x256xf32>
    %51 = vector.shape_cast %50 : vector<1x4x256xf32> to vector<4x256xf32>
    %52 = vector.shape_cast %49 : vector<4x256xf32> to vector<1x4x256xf32>
    tpu.vector_store %arg5[%c0_17, %c0_18, %c0_19], %52 {strides = array<i32>} : memref<1x4x256xf32, #tpu.memory_space<vmem>>, vector<1x4x256xf32>,
    return
  }
  func.func @transform_0(%arg0: i32) -> (i32, i32, i32) {
    %c0_i32 = arith.constant 0 : i32
    %c0_i32_0 = arith.constant 0 : i32
    %c0_i32_1 = arith.constant 0 : i32
    return %arg0, %c0_i32, %c0_i32_0 : i32, i32, i32
  }
  func.func @transform_1(%arg0: i32) -> (i32, i32) {
    %c0_i32 = arith.constant 0 : i32
    %c0_i32_0 = arith.constant 0 : i32
    %c0_i32_1 = arith.constant 0 : i32
    return %c0_i32, %c0_i32_0 : i32, i32
  }
  func.func @transform_2(%arg0: i32) -> (i32, i32) {
    %c0_i32 = arith.constant 0 : i32
    %c0_i32_0 = arith.constant 0 : i32
    %c0_i32_1 = arith.constant 0 : i32
    return %c0_i32, %c0_i32_0 : i32, i32
  }
  func.func @transform_3(%arg0: i32) -> (i32, i32) {
    %c0_i32 = arith.constant 0 : i32
    %c0_i32_0 = arith.constant 0 : i32
    %c0_i32_1 = arith.constant 0 : i32
    return %c0_i32, %c0_i32_0 : i32, i32
  }
  func.func @transform_4(%arg0: i32) -> (i32, i32, i32) {
    %c0_i32 = arith.constant 0 : i32
    %c0_i32_0 = arith.constant 0 : i32
    %c0_i32_1 = arith.constant 0 : i32
    return %arg0, %c0_i32, %c0_i32_0 : i32, i32, i32
  }
}

</mosaic_0001>

<bundles_post_ra>
// kernel: tpu_custom_call.1
= control target key start
LH: loop header
LB: loop body
LE: loop exit
PB: predicated region body
PF: predicated region fallthrough
CT: control target
= control target key end

     0   :  { %9 = vsyncpa [#allocation3], 0  ;;  %s3577_s0 = inlined_call_operand.vmem [shape: bf16[2,7,256], index: 0, kind: input, shape index: {}]   ;;  %s3578_s1 = inlined_call_operand.vmem [shape: bf16[48,7], index: 1, kind: input, shape index: {}]   ;;  %s3579_s2 = inlined_call_operand.vmem [shape: bf16[4,16], index: 2, kind: input, shape index: {}]   ;;  %s3580_s3 = inlined_call_operand.vmem [shape: f32[4,1], index: 3, kind: input, shape index: {}]   ;;  %s3581_s4 = inlined_call_operand.hbm [shape: f32[2,4,256], index: 4, kind: output, shape index: {}]  }
   0x1   :  { %11 = vsyncpa [#allocation3 + $0x1], 0  ;;  %s2317_s15 = smov 0   ;;  %s2319_s16 = smov 0  }
   0x2   :  { %s2321_s17 = smov 0   ;;  %s2323_s18 = smov 0  }
   0x3 LB: > { %s2338_s19 = sadd.s32 4294967295, %s2287_s18   ;;  %s1859_s20 = sadd.s32 4294967294, %s2287_s18   ;;  %s2287_s18 = sphi %s2323_s18, %s3736_s18   ;;  %s2283_s17 = sphi %s2321_s17, %s3735_s17   ;;  %s2279_s16 = sphi %s2319_s16, %s3734_s16   ;;  %s2275_s15 = sphi %s2317_s15, %s3733_s15  }
   0x4   : > { %s2342_s21 = sadd.s32 1, %s2287_s18   ;;  %s113_s22 = sadd.s32 1, %s2283_s17 }
   0x5   : > { %s110_s23 = ssub.s32 %s2287_s18, %s2342_s21  ;;  %p123_p0 = scmp.ne.s32.totalorder %s2283_s17, %s2279_s16 }
   0x6   : > { %p111_p1 = scmp.eq.s32.totalorder %s110_s23, 0  ;;  %p124_p2 = scmp.eq.s32.totalorder %s2338_s19, 1 }
   0x7   : > { %p129_p3 = scmp.ne.s32.totalorder %s2279_s16, %s2275_s15  ;;  %p130_p4 = scmp.eq.s32.totalorder %s1859_s20, 1 }
   0x8   : > { %s2353_s24 = scalar_select %p111_p1, %s2283_s17, %s113_s22  }
   0x9   : > { %p2355_p5 = por %p124_p2, %p123_p0  ;;  %p2359_p6 = por %p130_p4, %p129_p3 }
   0xa   : > { %p1862_p7 = scmp.ge.s32.totalorder %s2287_s18, 1  ;;  %p165_p8 = scmp.lt.s32.totalorder %s2287_s18, 3 }
   0xc   : > { %p166_p9 = pnand %p1862_p7, %p165_p8 }
   0xe   : > { %169 = sbr.rel (%p166_p9) target bundleno = 1676 (0x68c), region = 36 }
  0x13   : > { %p191_p10 = scmp.lt.s32.totalorder %s2338_s19, 1  ;;  %vm234_vm0 = vcmask 1042432   ;;  %v3582_v0 = vmov 0   ;;  %vm235_vm1 = vcmask 1043456   ;;  %v2290_v1 = vmov 65535   ;;  %v1960_v9 = vld [vmem:[%s3578_s1] sm:$0xff]  }
  0x14   : > { %276 = vmatprep.mubr.bf16.mxu1 %v3582_v0  ;;  %v236_v2 = vsel %vm234_vm0, 4294967295, %v2290_v1  ;;  %vm224_vm2 = vcmask 56320   ;;  %v1961_v10 = vld [vmem:[%s3578_s1 + $0x8] sm:$0xff]   ;;  %v1962_v11 = vld [vmem:[%s3578_s1 + $0x10] sm:$0xff]   ;;  %vm345_vm3 = vcmask 64512   ;;  %vm1735_vm4 = vcmask 130048  }
  0x15   : > { %s192_s27 = scalar_select %p191_p10, %s2338_s19, 1  ;;  %v237_v4 = vsel %vm235_vm1, %v236_v2, 0 }
  0x16   : > { %s188_s22 = sand.u32 1, %s2279_s16  }
  0x17   : > { %s1914_s28 = sshll.u32 %s192_s27, 3  ;;  %s1863_s23 = sshll.u32 %s188_s22, 3 }
  0x18   : > { %s195_s5 = scalar_lea.vmem %s3577_s0, %s1914_s28  ;;  %s1915_s27 = sshll.u32 %s2338_s19, 7 }
  0x19   : > { %v197_v3 = vld [vmem:[%s195_s5] sm:$0xff]  ;;  %s190_s28 = scalar_lea.vmem [#allocation2], %s1863_s23  ;;  %s3542_s6 = scalar_lea.hbm %s3581_s4, %s1915_s27 }
  0x1a   : > { %v1870_v5 = vcombine.high %v197_v3, %v197_v3  ;;  %v1869_v6 = vcombine.low %v197_v3, %v197_v3  ;;  %s1800_s29 = sshll.u32 %s190_s28, 4  ;;  %s1786_s7 = scalar_lea.sflag [#allocation3], %s188_s22  ;;  %s1801_s29 = int_to_ptr.vmem [resolvable:$true] %s1800_s29 }
  0x1b   : > { %s2227_s8 = scalar_lea.vmem %s1801_s29, 128  ;;  %s2291_s19 = smov [#allocation2]  }
  0x1c   : > { %v242_v7 = vand.u32 %v1870_v5, %v237_v4  ;;  %v239_v8 = vand.u32 %v1869_v6, %v237_v4  ;;  %p2228_p11 = scmp.ne.s32.totalorder %s1801_s29, %s2227_s8  ;;  %s2231_s9 = sshll.u32 %s2291_s19, 4  ;;  %s2232_s9 = int_to_ptr.vmem [resolvable:$false] %s2231_s9 }
  0x1d   : > { %s2233_s10 = scalar_lea.vmem %s2232_s9, 256  ;;  %p2234_p0 = scmp.lt.s32.totalorder %s1801_s29, %s2232_s9 }
  0x1e   : > { %258 = vmatprep.subr.bf16.mxu1 %v242_v7  ;;  %p2229_p12 = pnand %p2228_p11, %p2355_p5  ;;  %p2235_p1 = scmp.lt.s32.totalorder %s2233_s10, %s2227_s8 }
  0x1f   : > { %259 = vmatpush1.bf16.msra.mxu1 %v239_v8 }
  0x20   : > { %p2230_p13 = pneg %p2229_p12  ;;  %p2236_p2 = por %p2235_p1, %p2234_p0 }
  0x22   : > { %1871 = vmatmul.mubr.msk.bf16.vlgmr.msra.gmra.mxu1 %vm224_vm2, %v1960_v9  ;;  %p2237_p3 = pnand %p2236_p2, %p2230_p13 }
  0x23   : > { %286 = vmatprep.mubr.bf16.mxu1 %v3582_v0 }
  0x2a   : > { %1872 = vmatmul.mubr.msk.bf16.gmra.mxu1 %vm224_vm2, %v1961_v10 }
  0x2b   : > { %296 = vmatprep.mubr.bf16.mxu1 %v3582_v0 }
  0x32   : > { %1873 = vmatmul.mubr.msk.bf16.gmra.mxu1 %vm224_vm2, %v1962_v11 }
  0x33   : > { %432 = vmatprep.mubr.bf16.mxu1 %v3582_v0 }
  0xe2   : > { %v278_v12 = vpop.f32.mrf.mxu1 }
  0xe3   : > { %v307_v13 = vpack.c.bf16 %v278_v12, %v278_v12 }
  0xe4   : > { %v280_v14 = vpop.f32.mrf.mxu1 }
  0xe5   : > { %313 = vxpose.xlu0.c.b16.start.end [1/1] (short) %v307_v13, 128  ;;  %v308_v23 = vpack.c.bf16 %v280_v14, %v280_v14 }
  0xe6   : > { %v282_v15 = vpop.f32.mrf.mxu1 }
  0xe7   : > { %v1012_v16 = vpack.c.bf16 %v282_v15, %v282_v15 }
  0xe8   : > { %v284_v17 = vpop.f32.mrf.mxu1 }
  0xe9   : > { %1018 = vxpose.xlu1.c.b16.start.end [1/1] (short) %v1012_v16, 128  ;;  %v1013_v24 = vpack.c.bf16 %v284_v17, %v284_v17 }
  0xea   : > { %v288_v18 = vpop.f32.mrf.mxu1 }
  0xeb   : > { %v309_v19 = vpack.c.bf16 %v288_v18, %v288_v18 }
  0xec   : > { %v290_v20 = vpop.f32.mrf.mxu1 }
  0xed   : > { %v395_v21 = vsel %vm235_vm1, %v309_v19, 0  ;;  %v310_v22 = vpack.c.bf16 %v290_v20, %v290_v20 }
  0xee   : > { %v2387_v25 = vpop.f32.mrf.mxu1 }
  0xef   : > { %1874 = vmatprep.subr.msk.bf16.mxu1 %vm235_vm1, %v310_v22  ;;  %3629 = vst [vmem:[#allocation5_spill] sm:$0xff] %v2387_v25 }
  0xf0   : > { %415 = vmatpush1.bf16.msra.mxu1 %v395_v21  ;;  %v2389_v26 = vpop.f32.mrf.mxu1 }
  0xf1   : > { %3630 = vst [vmem:[#allocation6_spill] sm:$0xff] %v2389_v26 }
  0xf2   : > { %v2392_v28 = vpop.f32.mrf.mxu1 }
  0xf3   : > { %3631 = vst [vmem:[#allocation7_spill] sm:$0xff] %v2392_v28 }
  0xf4   : > { %v300_v29 = vpop.f32.mrf.mxu1 }
  0xf5   : > { %v312_v30 = vpack.c.bf16 %v300_v29, %v300_v29 }
  0xf6   : > { %v2421_v45 = vpop.f32.mrf.mxu1 }
  0xf7   : > { %997 = vmatprep.mubr.bf16.mxu0 %v312_v30  ;;  %3632 = vst [vmem:[#allocation8_spill] sm:$0xff] %v2421_v45 }
  0xf8   : > { %v304_v46 = vpop.f32.mrf.mxu1 }
  0xf9   : > { %v1017_v48 = vpack.c.bf16 %v304_v46, %v304_v46 }
 0x102   : > { %329 = vxpose.xlu0.c.b16.start.end [1/1] (short) %v308_v23, 128 }
 0x106   : > { %1034 = vxpose.xlu1.c.b16.start.end [1/1] (short) %v1013_v24, 128 }
 0x10b   : > { %1957 = vset.pattern.permute.xlu0 %v3582_v0 }
 0x147   : > { %v321_v27 = vpop.trf.xlu0 }
 0x148   : > { %1875 = vmatmul.mubr.msk.bf16.vlgmr.msra.gmra.mxu1 %vm345_vm3, %v321_v27 }
 0x149   : > { %442 = vmatprep.mubr.bf16.mxu1 %v3582_v0 }
 0x14b   : > { %v322_v31 = vpop.trf.xlu0 }
 0x14f   : > { %v323_v32 = vpop.trf.xlu0 }
 0x150   : > { %1876 = vmatmul.mubr.msk.bf16.gmra.mxu1 %vm345_vm3, %v322_v31 }
 0x151   : > { %452 = vmatprep.mubr.bf16.mxu1 %v3582_v0 }
 0x153   : > { %v324_v33 = vpop.trf.xlu0 }
 0x157   : > { %v325_v34 = vpop.trf.xlu0 }
 0x158   : > { %1877 = vmatmul.mubr.msk.bf16.gmra.mxu1 %vm345_vm3, %v323_v32 }
 0x159   : > { %462 = vmatprep.mubr.bf16.mxu1 %v3582_v0 }
 0x15b   : > { %v326_v35 = vpop.trf.xlu0 }
 0x15f   : > { %v327_v36 = vpop.trf.xlu0 }
 0x160   : > { %1878 = vmatmul.mubr.msk.bf16.gmra.mxu1 %vm345_vm3, %v324_v33 }
 0x161   : > { %472 = vmatprep.mubr.bf16.mxu1 %v3582_v0 }
 0x163   : > { %v328_v37 = vpop.trf.xlu0 }
 0x167   : > { %v337_v38 = vpop.trf.xlu0 }
 0x168   : > { %1879 = vmatmul.mubr.msk.bf16.gmra.mxu1 %vm345_vm3, %v325_v34 }
 0x169   : > { %482 = vmatprep.mubr.bf16.mxu1 %v3582_v0 }
 0x16b   : > { %v338_v39 = vpop.trf.xlu0 }
 0x16f   : > { %v339_v40 = vpop.trf.xlu0 }
 0x170   : > { %1880 = vmatmul.mubr.msk.bf16.gmra.mxu1 %vm345_vm3, %v326_v35 }
 0x171   : > { %492 = vmatprep.mubr.bf16.mxu1 %v3582_v0 }
 0x173   : > { %v340_v41 = vpop.trf.xlu0 }
 0x177   : > { %v341_v42 = vpop.trf.xlu0 }
 0x178   : > { %1881 = vmatmul.mubr.msk.bf16.gmra.mxu1 %vm345_vm3, %v327_v36 }
 0x179   : > { %502 = vmatprep.mubr.bf16.mxu1 %v3582_v0 }
 0x17b   : > { %v342_v43 = vpop.trf.xlu0 }
 0x17f   : > { %v343_v44 = vpop.trf.xlu0 }
 0x180   : > { %1882 = vmatmul.mubr.msk.bf16.gmra.mxu1 %vm345_vm3, %v328_v37 }
 0x181   : > { %512 = vmatprep.mubr.bf16.mxu1 %v3582_v0 }
 0x183   : > { %v344_v47 = vpop.trf.xlu0 }
 0x188   : > { %1883 = vmatmul.mubr.msk.bf16.gmra.mxu1 %vm345_vm3, %v337_v38 }
 0x189   : > { %522 = vmatprep.mubr.bf16.mxu1 %v3582_v0 }
 0x190   : > { %1884 = vmatmul.mubr.msk.bf16.gmra.mxu1 %vm345_vm3, %v338_v39 }
 0x191   : > { %532 = vmatprep.mubr.bf16.mxu1 %v3582_v0 }
 0x198   : > { %1885 = vmatmul.mubr.msk.bf16.gmra.mxu1 %vm345_vm3, %v339_v40 }
 0x199   : > { %542 = vmatprep.mubr.bf16.mxu1 %v3582_v0 }
 0x1a0   : > { %1886 = vmatmul.mubr.msk.bf16.gmra.mxu1 %vm345_vm3, %v340_v41 }
 0x1a1   : > { %552 = vmatprep.mubr.bf16.mxu1 %v3582_v0 }
 0x1a8   : > { %1887 = vmatmul.mubr.msk.bf16.gmra.mxu1 %vm345_vm3, %v341_v42 }
 0x1a9   : > { %562 = vmatprep.mubr.bf16.mxu1 %v3582_v0 }
 0x1b0   : > { %1888 = vmatmul.mubr.msk.bf16.gmra.mxu1 %vm345_vm3, %v342_v43 }
 0x1b1   : > { %572 = vmatprep.mubr.bf16.mxu1 %v3582_v0 }
 0x1b8   : > { %1889 = vmatmul.mubr.msk.bf16.gmra.mxu1 %vm345_vm3, %v343_v44 }
 0x1b9   : > { %582 = vmatprep.mubr.bf16.mxu1 %v3582_v0 }
 0x1c0   : > { %1890 = vmatmul.mubr.msk.bf16.gmra.mxu1 %vm345_vm3, %v344_v47 }
 0x1c1   : > { %1701 = vmatprep.mubr.bf16.mxu1 %v1017_v48 }
 0x208   : > { %v2426_v49 = vpop.f32.mrf.mxu1 }
 0x20a   : > { %v2428_v50 = vpop.f32.mrf.mxu1 }
 0x20c   : > { %v2430_v51 = vpop.f32.mrf.mxu1 }
 0x20e   : > { %v2432_v52 = vpop.f32.mrf.mxu1 }
 0x210   : > { %v2434_v53 = vpop.f32.mrf.mxu1 }
 0x211   : > { %v593_v38 = vmax.f32 %v2426_v49, %v2434_v53 }
 0x212   : > { %v2436_v54 = vpop.f32.mrf.mxu1 }
 0x214   : > { %v2438_v55 = vpop.f32.mrf.mxu1 }
 0x215   : > { %v594_v39 = vmax.f32 %v2430_v51, %v2438_v55 }
 0x216   : > { %v2440_v56 = vpop.f32.mrf.mxu1 }
 0x217   : > { %3633 = vst [vmem:[#allocation9_spill] sm:$0xff] %v2440_v56 }
 0x218   : > { %v2442_v57 = vpop.f32.mrf.mxu1 }
 0x219   : > { %v595_v41 = vmax.f32 %v593_v38, %v2442_v57 }
 0x21a   : > { %v2444_v58 = vpop.f32.mrf.mxu1 }
 0x21c   : > { %v2446_v59 = vpop.f32.mrf.mxu1 }
 0x21d   : > { %v596_v42 = vmax.f32 %v594_v39, %v2446_v59 }
 0x21e   : > { %v2448_v60 = vpop.f32.mrf.mxu1 }
 0x21f   : > { %3634 = vst [vmem:[#allocation10_spill] sm:$0xff] %v2448_v60 }
 0x220   : > { %v2450_v61 = vpop.f32.mrf.mxu1 }
 0x221   : > { %v597_v44 = vmax.f32 %v595_v41, %v2450_v61 }
 0x222   : > { %v2452_v62 = vpop.f32.mrf.mxu1 }
 0x224   : > { %v2454_v63 = vpop.f32.mrf.mxu1 }
 0x225   : > { %v598_v46 = vmax.f32 %v596_v42, %v2454_v63 }
 0x226   : > { %v2456_v1 = vpop.f32.mrf.mxu1 }
 0x227   : > { %3635 = vst [vmem:[#allocation11_spill] sm:$0xff] %v2456_v1 }
 0x228   : > { %v2458_v2 = vpop.f32.mrf.mxu1 }
 0x229   : > { %3636 = vst [vmem:[#allocation12_spill] sm:$0xff] %v2458_v2  ;;  %v599_v48 = vmax.f32 %v597_v44, %v2458_v2 }
 0x22a   : > { %v2460_v3 = vpop.f32.mrf.mxu1 }
 0x22b   : > { %3637 = vst [vmem:[#allocation13_spill] sm:$0xff] %v2460_v3 }
 0x22c   : > { %v2462_v4 = vpop.f32.mrf.mxu1 }
 0x22d   : > { %v600_v0 = vmax.f32 %v598_v46, %v2462_v4 }
 0x22e   : > { %v2464_v5 = vpop.f32.mrf.mxu1 }
 0x22f   : > { %3638 = vst [vmem:[#allocation14_spill] sm:$0xff] %v2464_v5 }
 0x230   : > { %v2466_v6 = vpop.f32.mrf.mxu1 }
 0x231   : > { %3639 = vst [vmem:[#allocation15_spill] sm:$0xff] %v2466_v6  ;;  %v601_v28 = vmax.f32 %v599_v48, %v2466_v6 }
 0x232   : > { %v2468_v7 = vpop.f32.mrf.mxu1 }
 0x234   : > { %v2470_v8 = vpop.f32.mrf.mxu1 }
 0x235   : > { %v602_v38 = vmax.f32 %v600_v0, %v2470_v8 }
 0x236   : > { %v2472_v9 = vpop.f32.mrf.mxu1 }
 0x238   : > { %v2474_v10 = vpop.f32.mrf.mxu1 }
 0x239   : > { %3640 = vst [vmem:[#allocation16_spill] sm:$0xff] %v2474_v10  ;;  %v603_v39 = vmax.f32 %v601_v28, %v2474_v10 }
 0x23a   : > { %v2476_v11 = vpop.f32.mrf.mxu1 }
 0x23c   : > { %v2478_v12 = vpop.f32.mrf.mxu1 }
 0x23d   : > { %v604_v41 = vmax.f32 %v602_v38, %v2478_v12  ;;  %v631_v38 = vmax.f32 %v2432_v52, %v2440_v56 }
 0x23e   : > { %v2480_v13 = vpop.f32.mrf.mxu1 }
 0x240   : > { %v2482_v14 = vpop.f32.mrf.mxu1 }
 0x241   : > { %v605_v42 = vmax.f32 %v603_v39, %v2482_v14 }
 0x242   : > { %v2484_v15 = vpop.f32.mrf.mxu1 }
 0x244   : > { %v2486_v16 = vpop.f32.mrf.mxu1 }
 0x245   : > { %3641 = vst [vmem:[#allocation17_spill] sm:$0xff] %v2486_v16  ;;  %v606_v44 = vmax.f32 %v604_v41, %v2486_v16 }
 0x246   : > { %v2488_v17 = vpop.f32.mrf.mxu1 }
 0x248   : > { %v2490_v18 = vpop.f32.mrf.mxu1 }
 0x249   : > { %v607_v46 = vmax.f32 %v605_v42, %v2490_v18  ;;  %v630_v42 = vmax.f32 %v2428_v50, %v2436_v54 }
 0x24a   : > { %v2492_v19 = vpop.f32.mrf.mxu1 }
 0x24c   : > { %v2494_v20 = vpop.f32.mrf.mxu1 }
 0x24d   : > { %v608_v48 = vmax.f32 %v606_v44, %v2494_v20  ;;  %v633_v44 = vmax.f32 %v631_v38, %v2448_v60 }
 0x24e   : > { %v2496_v21 = vpop.f32.mrf.mxu1 }
 0x24f   : > { %v635_v56 = vmax.f32 %v633_v44, %v2456_v1 }
 0x250   : > { %v2498_v22 = vpop.f32.mrf.mxu1 }
 0x251   : > { %3642 = vst [vmem:[#allocation18_spill] sm:$0xff] %v2498_v22  ;;  %v609_v0 = vmax.f32 %v607_v46, %v2498_v22  ;;  %v632_v22 = vmax.f32 %v630_v42, %v2444_v58  ;;  %v637_v38 = vmax.f32 %v635_v56, %v2464_v5 }
 0x252   : > { %v2500_v23 = vpop.f32.mrf.mxu1 }
 0x253   : > { %v639_v44 = vmax.f32 %v637_v38, %v2472_v9 }
 0x254   : > { %v2502_v24 = vpop.f32.mrf.mxu1 }
 0x255   : > { %3643 = vst [vmem:[#allocation19_spill] sm:$0xff] %v2502_v24  ;;  %v610_v28 = vmax.f32 %v608_v48, %v2502_v24  ;;  %v641_v56 = vmax.f32 %v639_v44, %v2480_v13 }
 0x256   : > { %v2504_v27 = vpop.f32.mrf.mxu1 }
 0x258   : > { %v2506_v29 = vpop.f32.mrf.mxu1 }
 0x259   : > { %3644 = vst [vmem:[#allocation20_spill] sm:$0xff] %v2506_v29  ;;  %v611_v39 = vmax.f32 %v609_v0, %v2506_v29  ;;  %v634_v29 = vmax.f32 %v632_v22, %v2452_v62 }
 0x25a   : > { %v2508_v30 = vpop.f32.mrf.mxu1 }
 0x25b   : > { %v636_v42 = vmax.f32 %v634_v29, %v2460_v3  ;;  %v643_v29 = vmax.f32 %v641_v56, %v2488_v17 }
 0x25c   : > { %v2510_v31 = vpop.f32.mrf.mxu1 }
 0x25d   : > { %3645 = vst [vmem:[#allocation21_spill] sm:$0xff] %v2510_v31  ;;  %v612_v41 = vmax.f32 %v610_v28, %v2510_v31  ;;  %v638_v22 = vmax.f32 %v636_v42, %v2468_v7 }
 0x25e   : > { %v2512_v32 = vpop.f32.mrf.mxu1 }
 0x25f   : > { %v640_v5 = vmax.f32 %v638_v22, %v2476_v11 }
 0x260   : > { %v2514_v33 = vpop.f32.mrf.mxu1 }
 0x261   : > { %v613_v46 = vmax.f32 %v611_v39, %v2514_v33  ;;  %v642_v38 = vmax.f32 %v640_v5, %v2484_v15 }
 0x262   : > { %v2516_v34 = vpop.f32.mrf.mxu1 }
 0x264   : > { %v2518_v35 = vpop.f32.mrf.mxu1 }
 0x265   : > { %v614_v48 = vmax.f32 %v612_v41, %v2518_v35 }
 0x266   : > { %v2520_v36 = vpop.f32.mrf.mxu1 }
 0x268   : > { %v2522_v37 = vpop.f32.mrf.mxu1 }
 0x269   : > { %v615_v0 = vmax.f32 %v613_v46, %v2522_v37 }
 0x26a   : > { %v2528_v40 = vpop.f32.mrf.mxu1 }
 0x26c   : > { %v2532_v43 = vpop.f32.mrf.mxu1 }
 0x26d   : > { %v616_v28 = vmax.f32 %v614_v48, %v2532_v43 }
 0x26e   : > { %v2536_v47 = vpop.f32.mrf.mxu1 }
 0x270   : > { %v2540_v45 = vpop.f32.mrf.mxu1 }
 0x271   : > { %v617_v39 = vmax.f32 %v615_v0, %v2540_v45 }
 0x272   : > { %v2544_v26 = vpop.f32.mrf.mxu1 }
 0x274   : > { %v2548_v25 = vpop.f32.mrf.mxu1 }
 0x275   : > { %v618_v41 = vmax.f32 %v616_v28, %v2548_v25 }
 0x276   : > { %v2552_v2 = vpop.f32.mrf.mxu1 }
 0x278   : > { %v2556_v6 = vpop.f32.mrf.mxu1 }
 0x279   : > { %3646 = vst [vmem:[#allocation22_spill] sm:$0xff] %v2556_v6  ;;  %v619_v46 = vmax.f32 %v617_v39, %v2556_v6  ;;  %v645_v39 = vmax.f32 %v643_v29, %v2496_v21 }
 0x27a   : > { %v2560_v10 = vpop.f32.mrf.mxu1 }
 0x27b   : > { %v647_v42 = vmax.f32 %v645_v39, %v2504_v27 }
 0x27c   : > { %v2566_v16 = vpop.f32.mrf.mxu1 }
 0x27d   : > { %3647 = vst [vmem:[#allocation23_spill] sm:$0xff] %v2566_v16  ;;  %v620_v48 = vmax.f32 %v618_v41, %v2566_v16  ;;  %v644_v16 = vmax.f32 %v642_v38, %v2492_v19 }
 0x27e   : > { %v2573_v24 = vpop.f32.mrf.mxu1 }
 0x27f   : > { %v646_v44 = vmax.f32 %v644_v16, %v2500_v23 }
 0x280   : > { %v2579_v31 = vpop.f32.mrf.mxu1 }
 0x281   : > { %v621_v0 = vmax.f32 %v619_v46, %v2579_v31  ;;  %v649_v46 = vmax.f32 %v647_v42, %v2512_v32  ;;  %v648_v22 = vmax.f32 %v646_v44, %v2508_v30 }
 0x282   : > { %v2585_v60 = vpop.f32.mrf.mxu1 }
 0x283   : > { %v651_v56 = vmax.f32 %v649_v46, %v2520_v36  ;;  %v650_v5 = vmax.f32 %v648_v22, %v2516_v34 }
 0x284   : > { %v2591_v1 = vpop.f32.mrf.mxu1 }
 0x285   : > { %v622_v28 = vmax.f32 %v620_v48, %v2591_v1  ;;  %v652_v38 = vmax.f32 %v650_v5, %v2528_v40 }
 0x287   : > { %v623_v3 = vmax.f32 %v621_v0, %v622_v28  ;;  %v653_v28 = vmax.f32 %v651_v56, %v2536_v47  ;;  %v654_v16 = vmax.f32 %v652_v38, %v2544_v26 }
 0x289   : > { %v624_v41 = vrot.slane %v623_v3, 4  ;;  %v655_v39 = vmax.f32 %v653_v28, %v2552_v2  ;;  %v656_v44 = vmax.f32 %v654_v16, %v2560_v10 }
 0x28b   : > { %v625_v6 = vmax.f32 %v623_v3, %v624_v41  ;;  %v2611_v3 = vpop.f32.mrf.mxu1  ;;  %v657_v41 = vmax.f32 %v655_v39, %v2573_v24  ;;  %v658_v46 = vmax.f32 %v656_v44, %v2585_v60 }
 0x28d   : > { %v626_v48 = vrot.slane %v625_v6, 2 }
 0x28f   : > { %v627_v0 = vmax.f32 %v625_v6, %v626_v48  ;;  %v659_v6 = vmax.f32 %v657_v41, %v2611_v3 }
 0x291   : > { %v628_v29 = vrot.slane %v627_v0, 1  ;;  %v660_v5 = vmax.f32 %v658_v46, %v659_v6 }
 0x293   : > { %v2615_v42 = vmax.f32 %v627_v0, %v628_v29  ;;  %v661_v16 = vrot.slane %v660_v5, 4 }
 0x295   : > { %v667_v48 = vsub.f32 %v2426_v49, %v2615_v42  ;;  %v669_v22 = vsub.f32 %v2430_v51, %v2615_v42  ;;  %v671_v56 = vsub.f32 %v2434_v53, %v2615_v42  ;;  %v673_v0 = vsub.f32 %v2438_v55, %v2615_v42 }
 0x296   : > { %v675_v38 = vsub.f32 %v2442_v57, %v2615_v42  ;;  %v677_v49 = vsub.f32 %v2446_v59, %v2615_v42  ;;  %v679_v53 = vsub.f32 %v2450_v61, %v2615_v42  ;;  %v662_v44 = vmax.f32 %v660_v5, %v661_v16  ;;  %v3648_v57 = vld [vmem:[#allocation12_spill] sm:$0xff] }
 0x297   : > { %v731_v28 = vmul.f32 1.442695, %v667_v48  ;;  %v735_v29 = vmul.f32 1.442695, %v669_v22  ;;  %v739_v39 = vmul.f32 1.442695, %v671_v56  ;;  %v681_v55 = vsub.f32 %v2454_v63, %v2615_v42 }
 0x298   : > { %v743_v51 = vmul.f32 1.442695, %v673_v0  ;;  %v747_v41 = vmul.f32 1.442695, %v675_v38  ;;  %v751_v6 = vmul.f32 1.442695, %v677_v49  ;;  %v683_v46 = vsub.f32 %v3648_v57, %v2615_v42 }
 0x299   : > { %1963 = vpow2.f32 %v731_v28  ;;  %v755_v48 = vmul.f32 1.442695, %v679_v53  ;;  %v685_v59 = vsub.f32 %v2462_v4, %v2615_v42  ;;  %v663_v22 = vrot.slane %v662_v44, 2  ;;  %v3649_v56 = vld [vmem:[#allocation15_spill] sm:$0xff]  ;;  %v3650_v63 = vld [vmem:[#allocation16_spill] sm:$0xff] }
 0x29a   : > { %1965 = vpow2.f32 %v735_v29  ;;  %v687_v61 = vsub.f32 %v3649_v56, %v2615_v42  ;;  %v759_v0 = vmul.f32 1.442695, %v681_v55  ;;  %v689_v5 = vsub.f32 %v2470_v8, %v2615_v42 }
 0x29b   : > { %1967 = vpow2.f32 %v739_v39  ;;  %v691_v28 = vsub.f32 %v3650_v63, %v2615_v42  ;;  %v763_v29 = vmul.f32 1.442695, %v683_v46  ;;  %v693_v38 = vsub.f32 %v2478_v12, %v2615_v42 }
 0x29c   : > { %1969 = vpow2.f32 %v743_v51  ;;  %v767_v39 = vmul.f32 1.442695, %v685_v59  ;;  %v664_v16 = vmax.f32 %v662_v44, %v663_v22  ;;  %v695_v49 = vsub.f32 %v2482_v14, %v2615_v42 }
 0x29d   : > { %1971 = vpow2.f32 %v747_v41  ;;  %v771_v51 = vmul.f32 1.442695, %v687_v61  ;;  %v711_v8 = vsub.f32 %v2514_v33, %v2615_v42  ;;  %v775_v41 = vmul.f32 1.442695, %v689_v5 }
 0x29e   : > { %1973 = vpow2.f32 %v751_v6  ;;  %v713_v55 = vsub.f32 %v2518_v35, %v2615_v42  ;;  %v779_v12 = vmul.f32 1.442695, %v691_v28  ;;  %v715_v14 = vsub.f32 %v2522_v37, %v2615_v42 }
 0x29f   : > { %1975 = vpow2.f32 %v755_v48  ;;  %v783_v57 = vmul.f32 1.442695, %v693_v38  ;;  %v665_v46 = vrot.slane %v664_v16, 1  ;;  %v717_v33 = vsub.f32 %v2532_v43, %v2615_v42  ;;  %v3652_v43 = vld [vmem:[#allocation17_spill] sm:$0xff] }
 0x2a0   : > { %1977 = vpow2.f32 %v759_v0  ;;  %v787_v48 = vmul.f32 1.442695, %v695_v49  ;;  %v719_v22 = vsub.f32 %v2540_v45, %v2615_v42  ;;  %v819_v56 = vmul.f32 1.442695, %v711_v8  ;;  %v3653_v8 = vld [vmem:[#allocation18_spill] sm:$0xff] }
 0x2a1   : > { %1979 = vpow2.f32 %v763_v29  ;;  %v721_v37 = vsub.f32 %v2548_v25, %v2615_v42  ;;  %v823_v61 = vmul.f32 1.442695, %v713_v55  ;;  %v697_v63 = vsub.f32 %v3652_v43, %v2615_v42 }
 0x2a2   : > { %1981 = vpow2.f32 %v767_v39  ;;  %v827_v28 = vmul.f32 1.442695, %v715_v14  ;;  %v2678_v29 = vmax.f32 %v664_v16, %v665_v46  ;;  %v699_v45 = vsub.f32 %v2490_v18, %v2615_v42 }
 0x2a3   : > { %1983 = vpow2.f32 %v771_v51  ;;  %v831_v38 = vmul.f32 1.442695, %v717_v33  ;;  %v701_v49 = vsub.f32 %v2494_v20, %v2615_v42  ;;  %v835_v51 = vmul.f32 1.442695, %v719_v22  ;;  %v3654_v33 = vld [vmem:[#allocation19_spill] sm:$0xff] }
 0x2a4   : > { %1985 = vpow2.f32 %v775_v41  ;;  %v703_v41 = vsub.f32 %v3653_v8, %v2615_v42  ;;  %v839_v16 = vmul.f32 1.442695, %v721_v37  ;;  %v791_v18 = vmul.f32 1.442695, %v697_v63 }
 0x2a5   : > { %1987 = vpow2.f32 %v779_v12  ;;  %v795_v14 = vmul.f32 1.442695, %v699_v45 }
 0x2a6   : > { %v2648_v4 = vpop.eup %1963  ;;  %1989 = vpow2.f32 %v783_v57  ;;  %v670_v57 = vsub.f32 %v2432_v52, %v2678_v29  ;;  %v803_v22 = vmul.f32 1.442695, %v703_v41 }
 0x2a7   : > { %v2652_v53 = vpop.eup %1965  ;;  %1991 = vpow2.f32 %v787_v48  ;;  %v705_v48 = vsub.f32 %v3654_v33, %v2615_v42 }
 0x2a8   : > { %3651 = vst [vmem:[#allocation12_spill] sm:$0xff] %v2652_v53  ;;  %v859_v44 = vadd.f32 %v2652_v53, %v2648_v4  ;;  %v2660_v6 = vpop.eup %1967  ;;  %1993 = vpow2.f32 %v819_v56 }
 0x2a9   : > { %v2667_v59 = vpop.eup %1969  ;;  %1995 = vpow2.f32 %v823_v61  ;;  %v3655_v61 = vld [vmem:[#allocation20_spill] sm:$0xff] }
 0x2aa   : > { %v860_v35 = vadd.f32 %v2660_v6, %v859_v44  ;;  %v2674_v5 = vpop.eup %1971  ;;  %1997 = vpow2.f32 %v827_v28  ;;  %v668_v44 = vsub.f32 %v2428_v50, %v2678_v29  ;;  %v672_v50 = vsub.f32 %v2436_v54, %v2678_v29  ;;  %v3656_v28 = vld [vmem:[#allocation9_spill] sm:$0xff] }
 0x2ab   : > { %v2683_v39 = vpop.eup %1973  ;;  %1999 = vpow2.f32 %v831_v38  ;;  %v674_v45 = vsub.f32 %v3656_v28, %v2678_v29  ;;  %v737_v38 = vmul.f32 1.442695, %v670_v57  ;;  %v3657_v54 = vld [vmem:[#allocation21_spill] sm:$0xff] }
 0x2ac   : > { %v861_v0 = vadd.f32 %v2667_v59, %v860_v35  ;;  %v2690_v12 = vpop.eup %1975  ;;  %v799_v35 = vmul.f32 1.442695, %v701_v49  ;;  %2001 = vpow2.f32 %v835_v51  ;;  %v733_v52 = vmul.f32 1.442695, %v668_v44 }
 0x2ad   : > { %v2697_v46 = vpop.eup %1977  ;;  %2003 = vpow2.f32 %v839_v16  ;;  %v709_v49 = vsub.f32 %v3657_v54, %v2615_v42  ;;  %v807_v51 = vmul.f32 1.442695, %v705_v48  ;;  %v676_v16 = vsub.f32 %v2444_v58, %v2678_v29 }
 0x2ae   : > { %v862_v25 = vadd.f32 %v2674_v5, %v861_v0  ;;  %v2704_v37 = vpop.eup %1979  ;;  %v707_v0 = vsub.f32 %v3655_v61, %v2615_v42  ;;  %2005 = vpow2.f32 %v791_v18  ;;  %v680_v48 = vsub.f32 %v2452_v62, %v2678_v29 }
 0x2af   : > { %v2708_v43 = vpop.eup %1981  ;;  %2007 = vpow2.f32 %v795_v14  ;;  %v3658_v14 = vld [vmem:[#allocation10_spill] sm:$0xff]  ;;  %v815_v58 = vmul.f32 1.442695, %v709_v49  ;;  %v749_v28 = vmul.f32 1.442695, %v676_v16  ;;  %v692_v62 = vsub.f32 %v2476_v11, %v2678_v29 }
 0x2b0   : > { %v863_v55 = vadd.f32 %v2683_v39, %v862_v25  ;;  %v2713_v25 = vpop.eup %1983  ;;  %2009 = vpow2.f32 %v799_v35  ;;  %v811_v44 = vmul.f32 1.442695, %v707_v0  ;;  %v745_v35 = vmul.f32 1.442695, %v674_v45 }
 0x2b1   : > { %v2717_v8 = vpop.eup %1985  ;;  %2011 = vpow2.f32 %v803_v22  ;;  %v694_v45 = vsub.f32 %v2480_v13, %v2678_v29  ;;  %v698_v11 = vsub.f32 %v2488_v17, %v2678_v29 }
 0x2b2   : > { %v864_v20 = vadd.f32 %v2690_v12, %v863_v55  ;;  %v741_v55 = vmul.f32 1.442695, %v672_v50  ;;  %v2722_v18 = vpop.eup %1987  ;;  %2013 = vpow2.f32 %v733_v52  ;;  %v3660_v52 = vld [vmem:[#allocation13_spill] sm:$0xff] }
 0x2b3   : > { %v2726_v57 = vpop.eup %1989  ;;  %2015 = vpow2.f32 %v737_v38 }
 0x2b4   : > { %v865_v56 = vadd.f32 %v2697_v46, %v864_v20  ;;  %v678_v20 = vsub.f32 %v3658_v14, %v2678_v29  ;;  %v2731_v22 = vpop.eup %1991  ;;  %2017 = vpow2.f32 %v807_v51 }
 0x2b5   : > { %v2735_v61 = vpop.eup %1993  ;;  %2019 = vpow2.f32 %v741_v55 }
 0x2b6   : > { %v866_v63 = vadd.f32 %v2704_v37, %v865_v56  ;;  %v3659_v56 = vld [vmem:[#allocation11_spill] sm:$0xff]  ;;  %v2740_v54 = vpop.eup %1995  ;;  %2021 = vpow2.f32 %v811_v44  ;;  %v753_v38 = vmul.f32 1.442695, %v678_v20  ;;  %v696_v44 = vsub.f32 %v2484_v15, %v2678_v29 }
 0x2b7   : > { %v682_v50 = vsub.f32 %v3659_v56, %v2678_v29  ;;  %v2746_v49 = vpop.eup %1997  ;;  %2023 = vpow2.f32 %v745_v35  ;;  %v781_v15 = vmul.f32 1.442695, %v692_v62 }
 0x2b8   : > { %v867_v41 = vadd.f32 %v2708_v43, %v866_v63  ;;  %v684_v63 = vsub.f32 %v3660_v52, %v2678_v29  ;;  %v2751_v16 = vpop.eup %1999  ;;  %2025 = vpow2.f32 %v815_v58  ;;  %v3661_v58 = vld [vmem:[#allocation14_spill] sm:$0xff] }
 0x2b9   : > { %v761_v13 = vmul.f32 1.442695, %v682_v50  ;;  %v2757_v14 = vpop.eup %2001  ;;  %2027 = vpow2.f32 %v749_v28  ;;  %v686_v56 = vsub.f32 %v3661_v58, %v2678_v29  ;;  %v785_v50 = vmul.f32 1.442695, %v694_v45 }
 0x2ba   : > { %v868_v33 = vadd.f32 %v2713_v25, %v867_v41  ;;  %v757_v41 = vmul.f32 1.442695, %v680_v48  ;;  %v2762_v35 = vpop.eup %2003  ;;  %2029 = vpow2.f32 %v753_v38  ;;  %v688_v28 = vsub.f32 %v2468_v7, %v2678_v29 }
 0x2bb   : > { %v690_v38 = vsub.f32 %v2472_v9, %v2678_v29  ;;  %v769_v48 = vmul.f32 1.442695, %v686_v56  ;;  %v3667_v56 = vld [vmem:[#allocation23_spill] sm:$0xff] }
 0x2bc   : > { %v869_v0 = vadd.f32 %v2717_v8, %v868_v33  ;;  %v765_v33 = vmul.f32 1.442695, %v684_v63  ;;  %2031 = vpow2.f32 %v757_v41  ;;  %v793_v41 = vmul.f32 1.442695, %v698_v11 }
 0x2bd   : > { %2033 = vpow2.f32 %v761_v13  ;;  %v777_v11 = vmul.f32 1.442695, %v690_v38 }
 0x2be   : > { %v870_v51 = vadd.f32 %v2722_v18, %v869_v0  ;;  %v2766_v0 = vpop.eup %2005  ;;  %2035 = vpow2.f32 %v765_v33 }
 0x2bf   : > { %v2771_v63 = vpop.eup %2007  ;;  %2037 = vpow2.f32 %v781_v15 }
 0x2c0   : > { %v871_v20 = vadd.f32 %v2726_v57, %v870_v51  ;;  %3662 = vst [vmem:[#allocation15_spill] sm:$0xff] %v2771_v63  ;;  %v789_v51 = vmul.f32 1.442695, %v696_v44  ;;  %v2775_v55 = vpop.eup %2009  ;;  %2039 = vpow2.f32 %v785_v50  ;;  %v3665_v44 = vld [vmem:[#allocation22_spill] sm:$0xff]  ;;  %v725_v50 = vsub.f32 %v3667_v56, %v2615_v42 }
 0x2c1   : > { %3663 = vst [vmem:[#allocation16_spill] sm:$0xff] %v2775_v55  ;;  %v2780_v45 = vpop.eup %2011  ;;  %v723_v13 = vsub.f32 %v3665_v44, %v2615_v42  ;;  %v720_v44 = vsub.f32 %v2544_v26, %v2678_v29 }
 0x2c2   : > { %v872_v17 = vadd.f32 %v2731_v22, %v871_v20  ;;  %3664 = vst [vmem:[#allocation17_spill] sm:$0xff] %v2780_v45  ;;  %v2782_v20 = vpop.eup %2013  ;;  %2041 = vpow2.f32 %v789_v51 }
 0x2c3   : > { %v2785_v7 = vpop.eup %2015  ;;  %2043 = vpow2.f32 %v793_v41  ;;  %v843_v41 = vmul.f32 1.442695, %v723_v13  ;;  %v729_v13 = vsub.f32 %v2591_v1, %v2615_v42 }
 0x2c4   : > { %v873_v62 = vadd.f32 %v2766_v0, %v872_v17  ;;  %v773_v17 = vmul.f32 1.442695, %v688_v28  ;;  %v2789_v52 = vpop.eup %2017  ;;  %v896_v33 = vadd.f32 %v2785_v7, %v2782_v20  ;;  %v727_v28 = vsub.f32 %v2579_v31, %v2615_v42 }
 0x2c5   : > { %3666 = vst [vmem:[#allocation18_spill] sm:$0xff] %v2789_v52  ;;  %v2794_v15 = vpop.eup %2019  ;;  %2045 = vpow2.f32 %v769_v48  ;;  %v702_v42 = vsub.f32 %v2496_v21, %v2678_v29 }
 0x2c6   : > { %v874_v58 = vadd.f32 %v2771_v63, %v873_v62  ;;  %v2798_v62 = vpop.eup %2021  ;;  %2047 = vpow2.f32 %v773_v17  ;;  %v722_v63 = vsub.f32 %v2552_v2, %v2678_v29  ;;  %v851_v26 = vmul.f32 1.442695, %v727_v28 }
 0x2c7   : > { %v2804_v38 = vpop.eup %2023  ;;  %2049 = vpow2.f32 %v777_v11  ;;  %v700_v2 = vsub.f32 %v2492_v19, %v2678_v29  ;;  %v837_v11 = vmul.f32 1.442695, %v720_v44 }
 0x2c8   : > { %v875_v9 = vadd.f32 %v2775_v55, %v874_v58  ;;  %v897_v58 = vadd.f32 %v2794_v15, %v896_v33  ;;  %v2808_v55 = vpop.eup %2025  ;;  %2051 = vpow2.f32 %v843_v41  ;;  %v704_v41 = vsub.f32 %v2500_v23, %v2678_v29 }
 0x2c9   : > { %3668 = vst [vmem:[#allocation19_spill] sm:$0xff] %v2808_v55  ;;  %v2814_v48 = vpop.eup %2027 }
 0x2ca   : > { %v876_v51 = vadd.f32 %v2780_v45, %v875_v9  ;;  %v898_v31 = vadd.f32 %v2804_v38, %v897_v58  ;;  %v847_v9 = vmul.f32 1.442695, %v725_v50  ;;  %v2816_v33 = vpop.eup %2029 }
 0x2cc   : > { %v877_v56 = vadd.f32 %v2789_v52, %v876_v51  ;;  %v899_v45 = vadd.f32 %v2814_v48, %v898_v31  ;;  %v2822_v51 = vpop.eup %2031  ;;  %v841_v52 = vmul.f32 1.442695, %v722_v63  ;;  %2053 = vpow2.f32 %v847_v9 }
 0x2cd   : > { %v2826_v58 = vpop.eup %2033  ;;  %2055 = vpow2.f32 %v851_v26  ;;  %v797_v9 = vmul.f32 1.442695, %v700_v2  ;;  %v801_v26 = vmul.f32 1.442695, %v702_v42  ;;  %v805_v2 = vmul.f32 1.442695, %v704_v41 }
 0x2ce   : > { %v878_v17 = vadd.f32 %v2798_v62, %v877_v56  ;;  %v900_v53 = vadd.f32 %v2816_v33, %v899_v45  ;;  %v2830_v1 = vpop.eup %2035  ;;  %v855_v56 = vmul.f32 1.442695, %v729_v13  ;;  %2057 = vpow2.f32 %v837_v11 }
 0x2cf   : > { %v2038_v28 = vpop.eup %2037  ;;  %2059 = vpow2.f32 %v841_v52  ;;  %v706_v13 = vsub.f32 %v2504_v27, %v2678_v29  ;;  %v708_v52 = vsub.f32 %v2508_v30, %v2678_v29 }
 0x2d0   : > { %v879_v50 = vadd.f32 %v2808_v55, %v878_v17  ;;  %v901_v44 = vadd.f32 %v2822_v51, %v900_v53  ;;  %v2040_v31 = vpop.eup %2039  ;;  %2061 = vpow2.f32 %v855_v56  ;;  %v712_v55 = vsub.f32 %v2516_v34, %v2678_v29 }
 0x2d1   : > { %v2838_v63 = vpop.eup %2041  ;;  %2063 = vpow2.f32 %v797_v9  ;;  %v946_v56 = vpack.c.bf16 %v2040_v31, %v2038_v28  ;;  %v809_v41 = vmul.f32 1.442695, %v706_v13  ;;  %v730_v9 = vsub.f32 %v2611_v3, %v2678_v29 }
 0x2d2   : > { %v880_v19 = vadd.f32 %v2735_v61, %v879_v50  ;;  %v902_v21 = vadd.f32 %v2826_v58, %v901_v44  ;;  %v2842_v17 = vpop.eup %2043  ;;  %2065 = vpow2.f32 %v801_v26  ;;  %v714_v13 = vsub.f32 %v2520_v36, %v2678_v29 }
 0x2d3   : > { %v948_v11 = vpack.c.bf16 %v2842_v17, %v2838_v63  ;;  %v2046_v50 = vpop.eup %2045  ;;  %2067 = vpow2.f32 %v805_v2  ;;  %v724_v3 = vsub.f32 %v2560_v10, %v2678_v29  ;;  %v726_v36 = vsub.f32 %v2573_v24, %v2678_v29 }
 0x2d4   : > { %v881_v45 = vadd.f32 %v2740_v54, %v880_v19  ;;  %v903_v23 = vadd.f32 %v2830_v1, %v902_v21  ;;  %v947_v19 = vpack.c.bf16 %v2766_v0, %v2731_v22  ;;  %v2048_v44 = vpop.eup %2047  ;;  %v710_v21 = vsub.f32 %v2512_v32, %v2678_v29 }
 0x2d5   : > { %965 = vmatprep.subr.bf16.mxu0 %v948_v11  ;;  %v728_v0 = vsub.f32 %v2585_v60, %v2678_v29  ;;  %v945_v32 = vpack.c.bf16 %v2726_v57, %v2722_v18  ;;  %v716_v60 = vsub.f32 %v2528_v40, %v2678_v29  ;;  %2069 = vpow2.f32 %v809_v41 }
 0x2d6   : > { %v882_v53 = vadd.f32 %v2746_v49, %v881_v45  ;;  %v904_v42 = vadd.f32 %v2046_v50, %v903_v23  ;;  %v2050_v45 = vpop.eup %2049  ;;  %966 = vmatpush1.bf16.msra.mxu0 %v947_v19  ;;  %v817_v26 = vmul.f32 1.442695, %v710_v21  ;;  %v821_v57 = vmul.f32 1.442695, %v712_v55 }
 0x2d7   : > { %967 = vmatprep.subr.bf16.mxu0 %v946_v56  ;;  %v944_v11 = vpack.c.bf16 %v2050_v45, %v2048_v44  ;;  %v2867_v19 = vpop.eup %2051  ;;  %v857_v40 = vmul.f32 1.442695, %v730_v9  ;;  %v943_v10 = vpack.c.bf16 %v2717_v8, %v2713_v25  ;;  %v942_v55 = vpack.c.bf16 %v2046_v50, %v2830_v1 }
 0x2d8   : > { %v883_v27 = vadd.f32 %v2751_v16, %v882_v53  ;;  %v905_v22 = vadd.f32 %v2048_v44, %v904_v42  ;;  %v813_v53 = vmul.f32 1.442695, %v708_v52  ;;  %v718_v21 = vsub.f32 %v2536_v47, %v2678_v29 }
 0x2d9   : > { %v2875_v52 = vpop.eup %2053  ;;  %v825_v24 = vmul.f32 1.442695, %v714_v13  ;;  %v845_v1 = vmul.f32 1.442695, %v724_v3  ;;  %v849_v50 = vmul.f32 1.442695, %v726_v36  ;;  %v941_v47 = vpack.c.bf16 %v2708_v43, %v2704_v37 }
 0x2da   : > { %v884_v30 = vadd.f32 %v2757_v14, %v883_v27  ;;  %v906_v34 = vadd.f32 %v2050_v45, %v905_v22  ;;  %968 = vmatpush1.bf16.msra.mxu0 %v945_v32  ;;  %v2878_v44 = vpop.eup %2055  ;;  %v853_v27 = vmul.f32 1.442695, %v728_v0  ;;  %2071 = vpow2.f32 %v813_v53 }
 0x2db   : > { %969 = vmatprep.subr.bf16.mxu0 %v944_v11  ;;  %v2884_v42 = vpop.eup %2057  ;;  %2073 = vpow2.f32 %v817_v26  ;;  %v940_v0 = vpack.c.bf16 %v2826_v58, %v2822_v51  ;;  %v833_v9 = vmul.f32 1.442695, %v718_v21  ;;  %v939_v37 = vpack.c.bf16 %v2697_v46, %v2690_v12 }
 0x2dc   : > { %v885_v23 = vadd.f32 %v2762_v35, %v884_v30  ;;  %v907_v2 = vadd.f32 %v2038_v28, %v906_v34  ;;  %v2888_v28 = vpop.eup %2059  ;;  %v829_v30 = vmul.f32 1.442695, %v716_v60  ;;  %2075 = vpow2.f32 %v821_v57 }
 0x2dd   : > { %v960_v8 = vpack.c.bf16 %v2888_v28, %v2884_v42  ;;  %2077 = vpow2.f32 %v853_v27  ;;  %v938_v51 = vpack.c.bf16 %v2816_v33, %v2814_v48  ;;  %v937_v34 = vpack.c.bf16 %v2683_v39, %v2674_v5 }
 0x2de   : > { %v886_v18 = vadd.f32 %v2867_v19, %v885_v23  ;;  %v908_v45 = vadd.f32 %v2040_v31, %v907_v2  ;;  %970 = vmatpush1.bf16.msra.mxu0 %v943_v10  ;;  %v2062_v31 = vpop.eup %2061  ;;  %2079 = vpow2.f32 %v857_v40  ;;  %v936_v13 = vpack.c.bf16 %v2804_v38, %v2794_v15  ;;  %v3669_v38 = vld [vmem:[#allocation12_spill] sm:$0xff] }
 0x2df   : > { %971 = vmatprep.subr.bf16.mxu0 %v942_v55  ;;  %2081 = vpow2.f32 %v825_v24  ;;  %v935_v48 = vpack.c.bf16 %v2667_v59, %v2660_v6  ;;  %v933_v2 = vpack.c.bf16 %v3669_v38, %v2648_v4  ;;  %v961_v55 = vpack.c.bf16 %v2875_v52, %v2867_v19 }
 0x2e0   : > { %v887_v56 = vadd.f32 %v2875_v52, %v886_v18  ;;  %v909_v25 = vadd.f32 %v2838_v63, %v908_v45  ;;  %v2903_v63 = vpop.eup %2063  ;;  %2083 = vpow2.f32 %v829_v30  ;;  %v934_v18 = vpack.c.bf16 %v2785_v7, %v2782_v20 }
 0x2e1   : > { %v2906_v32 = vpop.eup %2065  ;;  %2085 = vpow2.f32 %v845_v1  ;;  %v3671_v19 = vpack.c.bf16 %v2751_v16, %v2746_v49  ;;  %v3675_v1 = vld [vmem:[#allocation18_spill] sm:$0xff]  ;;  %v3676_v16 = vld [vmem:[#allocation15_spill] sm:$0xff] }
 0x2e2   : > { %v888_v41 = vadd.f32 %v2878_v44, %v887_v56  ;;  %v910_v22 = vadd.f32 %v2842_v17, %v909_v25  ;;  %972 = vmatpush1.bf16.msra.mxu0 %v941_v47  ;;  %2087 = vpow2.f32 %v849_v50  ;;  %v2068_v58 = vpop.eup %2067  ;;  %v963_v56 = vpack.c.bf16 %v2062_v31, %v2878_v44  ;;  %v3677_v47 = vld [vmem:[#allocation16_spill] sm:$0xff] }
 0x2e3   : > { %973 = vmatprep.subr.bf16.mxu0 %v940_v0  ;;  %2089 = vpow2.f32 %v833_v9  ;;  %v2070_v23 = vpop.eup %2069  ;;  %v3670_v44 = vpack.c.bf16 %v2762_v35, %v2757_v14  ;;  %v950_v49 = vpack.c.bf16 %v2906_v32, %v2903_v63  ;;  %v3679_v0 = vld [vmem:[#allocation6_spill] sm:$0xff]  ;;  %v3680_v9 = vld [vmem:[#allocation7_spill] sm:$0xff] }
 0x2e4   : > { %v2898_v29 = vadd.f32 %v2062_v31, %v888_v41  ;;  %v911_v53 = vadd.f32 %v2903_v63, %v910_v22  ;;  %v952_v35 = vpack.c.bf16 %v2070_v23, %v2068_v58  ;;  %v949_v22 = vpack.c.bf16 %v3677_v47, %v3676_v16 }
 0x2e5   : > { %v3681_v63 = vmov 0  }
 0x2e6   : > { %v912_v43 = vadd.f32 %v2906_v32, %v911_v53  ;;  %974 = vmatpush1.bf16.msra.mxu0 %v939_v37  ;;  %v311_v53 = vpack.c.bf16 %v3680_v9, %v3680_v9  ;;  %v1026_v32 = vpop.trf.xlu1 }
 0x2e7   : > { %975 = vmatprep.subr.bf16.mxu0 %v938_v51  ;;  %v2072_v12 = vpop.eup %2071 }
 0x2e8   : > { %v913_v17 = vadd.f32 %v2068_v58, %v912_v43  ;;  %v2074_v46 = vpop.eup %2073 }
 0x2e9   : > { %v2076_v3 = vpop.eup %2075  ;;  %v954_v52 = vpack.c.bf16 %v2074_v46, %v2072_v12 }
 0x2ea   : > { %v914_v11 = vadd.f32 %v2070_v23, %v913_v17  ;;  %976 = vmatpush1.bf16.msra.mxu0 %v937_v34  ;;  %v2078_v33 = vpop.eup %2077  ;;  %v1027_v43 = vpop.trf.xlu1 }
 0x2eb   : > { %977 = vmatprep.subr.bf16.mxu0 %v936_v13  ;;  %v2080_v57 = vpop.eup %2079 }
 0x2ec   : > { %v915_v60 = vadd.f32 %v2072_v12, %v914_v11  ;;  %v2082_v5 = vpop.eup %2081  ;;  %v964_v40 = vpack.c.bf16 %v2080_v57, %v2078_v33 }
 0x2ed   : > { %v2084_v15 = vpop.eup %2083  ;;  %v956_v31 = vpack.c.bf16 %v2082_v5, %v2076_v3 }
 0x2ee   : > { %v916_v26 = vadd.f32 %v2074_v46, %v915_v60  ;;  %978 = vmatpush1.bf16.msra.mxu0 %v935_v48  ;;  %v2086_v36 = vpop.eup %2085  ;;  %v1028_v51 = vpop.trf.xlu1 }
 0x2ef   : > { %979 = vmatprep.subr.bf16.mxu0 %v934_v18  ;;  %v2088_v10 = vpop.eup %2087  ;;  %v890_v18 = vrot.slane %v2898_v29, 4 }
 0x2f0   : > { %v917_v39 = vadd.f32 %v2076_v3, %v916_v26  ;;  %v2090_v59 = vpop.eup %2089  ;;  %v962_v7 = vpack.c.bf16 %v2088_v10, %v2086_v36 }
 0x2f1   : > { %v958_v30 = vpack.c.bf16 %v2090_v59, %v2084_v15 }
 0x2f2   : > { %v918_v27 = vadd.f32 %v2082_v5, %v917_v39  ;;  %980 = vmatpush1.bf16.msra.mxu0 %v933_v2  ;;  %v1029_v58 = vpop.trf.xlu1  ;;  %v891_v5 = vadd.f32 %v890_v18, %v2898_v29 }
 0x2f3   : > { %981 = vmatprep.subr.bf16.mxu0 %v964_v40 }
 0x2f4   : > { %v919_v6 = vadd.f32 %v2084_v15, %v918_v27  ;;  %v892_v15 = vrot.slane %v891_v5, 2 }
 0x2f6   : > { %v920_v20 = vadd.f32 %v2090_v59, %v919_v6  ;;  %982 = vmatpush2.bf16.msra.mxu0 %v963_v56  ;;  %v1030_v17 = vpop.trf.xlu1  ;;  %v893_v2 = vadd.f32 %v892_v15, %v891_v5 }
 0x2f7   : > { %983 = vmatprep.subr.bf16.mxu0 %v962_v7 }
 0x2f8   : > { %v921_v45 = vadd.f32 %v2884_v42, %v920_v20  ;;  %v3672_v42 = vpack.c.bf16 %v2740_v54, %v2735_v61  ;;  %v3678_v61 = vld [vmem:[#allocation5_spill] sm:$0xff]  ;;  %v894_v27 = vrot.slane %v893_v2, 1 }
 0x2f9   : > { %v1014_v54 = vpack.c.bf16 %v3678_v61, %v3678_v61 }
 0x2fa   : > { %v922_v4 = vadd.f32 %v2888_v28, %v921_v45  ;;  %984 = vmatpush2.bf16.msra.mxu0 %v961_v55  ;;  %v3673_v28 = vld [vmem:[#allocation19_spill] sm:$0xff]  ;;  %v1031_v23 = vpop.trf.xlu1 }
 0x2fb   : > { %985 = vmatprep.subr.bf16.mxu0 %v960_v8  ;;  %v953_v14 = vpack.c.bf16 %v3673_v28, %v2798_v62  ;;  %v3674_v8 = vld [vmem:[#allocation17_spill] sm:$0xff]  ;;  %v1015_v62 = vpack.c.bf16 %v3679_v0, %v3679_v0  ;;  %v1099_v37 = vsel %vm235_vm1, %v1014_v54, 0 }
 0x2fc   : > { %v923_v21 = vadd.f32 %v2086_v36, %v922_v4  ;;  %v951_v50 = vpack.c.bf16 %v3675_v1, %v3674_v8 }
 0x2fe   : > { %v924_v24 = vadd.f32 %v2088_v10, %v923_v21  ;;  %986 = vmatpush2.bf16.msra.mxu0 %v3670_v44  ;;  %v1032_v34 = vpop.trf.xlu1  ;;  %v895_v10 = vadd.f32 %v894_v27, %v893_v2 }
 0x2ff   : > { %987 = vmatprep.subr.bf16.mxu0 %v958_v30 }
 0x300   : > { %v925_v41 = vadd.f32 %v2078_v33, %v924_v24  ;;  %2091 = vrcp.f32 %v895_v10 }
 0x302   : > { %v2934_v25 = vadd.f32 %v2080_v57, %v925_v41  ;;  %988 = vmatpush2.bf16.msra.mxu0 %v3671_v19  ;;  %v1033_v11 = vpop.trf.xlu1 }
 0x303   : > { %989 = vmatprep.subr.bf16.mxu0 %v956_v31 }
 0x304   : > { %v927_v57 = vrot.slane %v2934_v25, 4 }
 0x306   : > { %990 = vmatpush2.bf16.msra.mxu0 %v3672_v42  ;;  %v1042_v13 = vpop.trf.xlu1  ;;  %v928_v39 = vadd.f32 %v927_v57, %v2934_v25 }
 0x307   : > { %991 = vmatprep.subr.bf16.mxu0 %v954_v52 }
 0x308   : > { %v929_v38 = vrot.slane %v928_v39, 2 }
 0x30a   : > { %992 = vmatpush2.bf16.msra.mxu0 %v953_v14  ;;  %v1043_v12 = vpop.trf.xlu1  ;;  %v930_v36 = vadd.f32 %v929_v38, %v928_v39 }
 0x30b   : > { %993 = vmatprep.subr.bf16.mxu0 %v952_v35 }
 0x30c   : > { %v931_v40 = vrot.slane %v930_v36, 1 }
 0x30d   : > { %v2092_v59 = vpop.eup %2091 }
 0x30e   : > { %994 = vmatpush2.bf16.msra.mxu0 %v951_v50  ;;  %v1044_v46 = vpop.trf.xlu1  ;;  %v932_v6 = vadd.f32 %v931_v40, %v930_v36 }
 0x30f   : > { %995 = vmatprep.subr.bf16.mxu0 %v950_v49 }
 0x310   : > { %2093 = vrcp.f32 %v932_v6 }
 0x312   : > { %996 = vmatpush2.bf16.msra.mxu0 %v949_v22  ;;  %v1045_v60 = vpop.trf.xlu1 }
 0x313   : > { %1891 = vmatprep.subr.msk.bf16.mxu0 %vm235_vm1, %v1015_v62 }
 0x315   : > { %998 = vmatmul.mubr.bf16.vlgmr.msra.gmra.mxu0 %v311_v53 }
 0x316   : > { %1119 = vmatpush1.bf16.msra.mxu0 %v1099_v37  ;;  %1136 = vmatprep.mubr.bf16.mxu0 %v3681_v63  ;;  %v1046_v3 = vpop.trf.xlu1 }
 0x31a   : > { %v1047_v48 = vpop.trf.xlu1 }
 0x31d   : > { %1892 = vmatmul.mubr.msk.bf16.vlgmr.msra.gmra.mxu0 %vm345_vm3, %v1026_v32  ;;  %v2094_v7 = vpop.eup %2093 }
 0x31e   : > { %1146 = vmatprep.mubr.bf16.mxu0 %v3681_v63  ;;  %v1048_v33 = vpop.trf.xlu1 }
 0x322   : > { %v1049_v26 = vpop.trf.xlu1 }
 0x325   : > { %1893 = vmatmul.mubr.msk.bf16.gmra.mxu0 %vm345_vm3, %v1027_v43 }
 0x326   : > { %1156 = vmatprep.mubr.bf16.mxu0 %v3681_v63 }
 0x32d   : > { %1894 = vmatmul.mubr.msk.bf16.gmra.mxu0 %vm345_vm3, %v1028_v51 }
 0x32e   : > { %1166 = vmatprep.mubr.bf16.mxu0 %v3681_v63 }
 0x335   : > { %1895 = vmatmul.mubr.msk.bf16.gmra.mxu0 %vm345_vm3, %v1029_v58 }
 0x336   : > { %1176 = vmatprep.mubr.bf16.mxu0 %v3681_v63 }
 0x33d   : > { %1896 = vmatmul.mubr.msk.bf16.gmra.mxu0 %vm345_vm3, %v1030_v17 }
 0x33e   : > { %1186 = vmatprep.mubr.bf16.mxu0 %v3681_v63 }
 0x345   : > { %1897 = vmatmul.mubr.msk.bf16.gmra.mxu0 %vm345_vm3, %v1031_v23 }
 0x346   : > { %1196 = vmatprep.mubr.bf16.mxu0 %v3681_v63 }
 0x34d   : > { %1898 = vmatmul.mubr.msk.bf16.gmra.mxu0 %vm345_vm3, %v1032_v34 }
 0x34e   : > { %1206 = vmatprep.mubr.bf16.mxu0 %v3681_v63 }
 0x355   : > { %1899 = vmatmul.mubr.msk.bf16.gmra.mxu0 %vm345_vm3, %v1033_v11 }
 0x356   : > { %1216 = vmatprep.mubr.bf16.mxu0 %v3681_v63 }
 0x35d   : > { %1900 = vmatmul.mubr.msk.bf16.gmra.mxu0 %vm345_vm3, %v1042_v13 }
 0x35e   : > { %1226 = vmatprep.mubr.bf16.mxu0 %v3681_v63 }
 0x365   : > { %1901 = vmatmul.mubr.msk.bf16.gmra.mxu0 %vm345_vm3, %v1043_v12 }
 0x366   : > { %1236 = vmatprep.mubr.bf16.mxu0 %v3681_v63 }
 0x36d   : > { %1902 = vmatmul.mubr.msk.bf16.gmra.mxu0 %vm345_vm3, %v1044_v46 }
 0x36e   : > { %1246 = vmatprep.mubr.bf16.mxu0 %v3681_v63 }
 0x375   : > { %1903 = vmatmul.mubr.msk.bf16.gmra.mxu0 %vm345_vm3, %v1045_v60 }
 0x376   : > { %1256 = vmatprep.mubr.bf16.mxu0 %v3681_v63 }
 0x37d   : > { %1904 = vmatmul.mubr.msk.bf16.gmra.mxu0 %vm345_vm3, %v1046_v3 }
 0x37e   : > { %1266 = vmatprep.mubr.bf16.mxu0 %v3681_v63 }
 0x385   : > { %1905 = vmatmul.mubr.msk.bf16.gmra.mxu0 %vm345_vm3, %v1047_v48 }
 0x386   : > { %1276 = vmatprep.mubr.bf16.mxu0 %v3681_v63 }
 0x38d   : > { %1906 = vmatmul.mubr.msk.bf16.gmra.mxu0 %vm345_vm3, %v1048_v33 }
 0x38e   : > { %1286 = vmatprep.mubr.bf16.mxu0 %v3681_v63 }
 0x395   : > { %1907 = vmatmul.mubr.msk.bf16.gmra.mxu0 %vm345_vm3, %v1049_v26 }
 0x3d5   : > { %v999_v56 = vpop.f32.mrf.mxu0 }
 0x3d6   : > { %v2994_v20 = vmul.f32 %v2092_v59, %v999_v56 }
 0x3d7   : > { %v1001_v45 = vpop.f32.mrf.mxu0 }
 0x3d8   : > { %3682 = vst [vmem:[#allocation20_spill] sm:$0xff] %v2994_v20  ;;  %v2996_v55 = vmul.f32 %v2094_v7, %v1001_v45 }
 0x3d9   : > { %v1003_v29 = vpop.f32.mrf.mxu0 }
 0x3da   : > { %3683 = vst [vmem:[#allocation9_spill] sm:$0xff] %v2996_v55 }
 0x3db   : > { %v1004_v4 = vpop.f32.mrf.mxu0 }
 0x3dd   : > { %v2998_v21 = vpop.f32.mrf.mxu0 }
 0x3df   : > { %v3000_v24 = vpop.f32.mrf.mxu0 }
 0x3e1   : > { %v3002_v30 = vpop.f32.mrf.mxu0 }
 0x3e3   : > { %v3004_v44 = vpop.f32.mrf.mxu0 }
 0x3e5   : > { %v3006_v41 = vpop.f32.mrf.mxu0 }
 0x3e6   : > { %v1297_v2 = vmax.f32 %v2998_v21, %v3006_v41 }
 0x3e7   : > { %v3008_v25 = vpop.f32.mrf.mxu0 }
 0x3e9   : > { %v3010_v31 = vpop.f32.mrf.mxu0 }
 0x3ea   : > { %v1298_v36 = vmax.f32 %v3002_v30, %v3010_v31 }
 0x3eb   : > { %v3012_v19 = vpop.f32.mrf.mxu0 }
 0x3ec   : > { %3684 = vst [vmem:[#allocation21_spill] sm:$0xff] %v3012_v19 }
 0x3ed   : > { %v3014_v52 = vpop.f32.mrf.mxu0 }
 0x3ee   : > { %v1299_v40 = vmax.f32 %v1297_v2, %v3014_v52 }
 0x3ef   : > { %v3016_v42 = vpop.f32.mrf.mxu0 }
 0x3f1   : > { %v3018_v28 = vpop.f32.mrf.mxu0 }
 0x3f2   : > { %v1300_v10 = vmax.f32 %v1298_v36, %v3018_v28 }
 0x3f3   : > { %v3020_v14 = vpop.f32.mrf.mxu0 }
 0x3f4   : > { %3685 = vst [vmem:[#allocation10_spill] sm:$0xff] %v3020_v14 }
 0x3f5   : > { %v3022_v35 = vpop.f32.mrf.mxu0 }
 0x3f6   : > { %v1301_v59 = vmax.f32 %v1299_v40, %v3022_v35 }
 0x3f7   : > { %v3024_v8 = vpop.f32.mrf.mxu0 }
 0x3f9   : > { %v3026_v1 = vpop.f32.mrf.mxu0 }
 0x3fa   : > { %v1302_v56 = vmax.f32 %v1300_v10, %v3026_v1 }
 0x3fb   : > { %v3028_v50 = vpop.f32.mrf.mxu0 }
 0x3fc   : > { %3686 = vst [vmem:[#allocation11_spill] sm:$0xff] %v3028_v50 }
 0x3fd   : > { %v3030_v49 = vpop.f32.mrf.mxu0 }
 0x3fe   : > { %3687 = vst [vmem:[#allocation13_spill] sm:$0xff] %v3030_v49  ;;  %v1303_v45 = vmax.f32 %v1301_v59, %v3030_v49 }
 0x3ff   : > { %v3032_v16 = vpop.f32.mrf.mxu0 }
 0x400   : > { %3688 = vst [vmem:[#allocation14_spill] sm:$0xff] %v3032_v16 }
 0x401   : > { %v3034_v47 = vpop.f32.mrf.mxu0 }
 0x402   : > { %v1304_v29 = vmax.f32 %v1302_v56, %v3034_v47 }
 0x403   : > { %v3036_v22 = vpop.f32.mrf.mxu0 }
 0x404   : > { %3689 = vst [vmem:[#allocation22_spill] sm:$0xff] %v3036_v22 }
 0x405   : > { %v3038_v61 = vpop.f32.mrf.mxu0 }
 0x406   : > { %3690 = vst [vmem:[#allocation23_spill] sm:$0xff] %v3038_v61  ;;  %v1305_v55 = vmax.f32 %v1303_v45, %v3038_v61 }
 0x407   : > { %v3040_v54 = vpop.f32.mrf.mxu0 }
 0x409   : > { %v3042_v0 = vpop.f32.mrf.mxu0 }
 0x40a   : > { %v1306_v2 = vmax.f32 %v1304_v29, %v3042_v0 }
 0x40b   : > { %v3044_v62 = vpop.f32.mrf.mxu0 }
 0x40d   : > { %v3046_v9 = vpop.f32.mrf.mxu0 }
 0x40e   : > { %3691 = vst [vmem:[#allocation12_spill] sm:$0xff] %v3046_v9  ;;  %v1307_v36 = vmax.f32 %v1305_v55, %v3046_v9 }
 0x40f   : > { %v3048_v53 = vpop.f32.mrf.mxu0 }
 0x411   : > { %v3050_v37 = vpop.f32.mrf.mxu0 }
 0x412   : > { %v1308_v40 = vmax.f32 %v1306_v2, %v3050_v37  ;;  %v1335_v2 = vmax.f32 %v3004_v44, %v3012_v19 }
 0x413   : > { %v3052_v32 = vpop.f32.mrf.mxu0 }
 0x415   : > { %v3054_v43 = vpop.f32.mrf.mxu0 }
 0x416   : > { %v1309_v10 = vmax.f32 %v1307_v36, %v3054_v43 }
 0x417   : > { %v3056_v51 = vpop.f32.mrf.mxu0 }
 0x419   : > { %v3058_v58 = vpop.f32.mrf.mxu0 }
 0x41a   : > { %3692 = vst [vmem:[#allocation19_spill] sm:$0xff] %v3058_v58  ;;  %v1310_v59 = vmax.f32 %v1308_v40, %v3058_v58 }
 0x41b   : > { %v3060_v17 = vpop.f32.mrf.mxu0 }
 0x41d   : > { %v3062_v23 = vpop.f32.mrf.mxu0 }
 0x41e   : > { %v1311_v56 = vmax.f32 %v1309_v10, %v3062_v23  ;;  %v1334_v10 = vmax.f32 %v3000_v24, %v3008_v25 }
 0x41f   : > { %v3064_v34 = vpop.f32.mrf.mxu0 }
 0x421   : > { %v3066_v11 = vpop.f32.mrf.mxu0 }
 0x422   : > { %v1312_v45 = vmax.f32 %v1310_v59, %v3066_v11  ;;  %v1337_v59 = vmax.f32 %v1335_v2, %v3020_v14 }
 0x423   : > { %v3068_v13 = vpop.f32.mrf.mxu0 }
 0x424   : > { %v1339_v19 = vmax.f32 %v1337_v59, %v3028_v50 }
 0x425   : > { %v3070_v12 = vpop.f32.mrf.mxu0 }
 0x426   : > { %3693 = vst [vmem:[#allocation17_spill] sm:$0xff] %v3070_v12  ;;  %v1313_v29 = vmax.f32 %v1311_v56, %v3070_v12  ;;  %v1336_v12 = vmax.f32 %v1334_v10, %v3016_v42  ;;  %v1341_v2 = vmax.f32 %v1339_v19, %v3036_v22 }
 0x427   : > { %v3072_v46 = vpop.f32.mrf.mxu0 }
 0x428   : > { %v1343_v59 = vmax.f32 %v1341_v2, %v3044_v62 }
 0x429   : > { %v3074_v60 = vpop.f32.mrf.mxu0 }
 0x42a   : > { %3694 = vst [vmem:[#allocation18_spill] sm:$0xff] %v3074_v60  ;;  %v1314_v55 = vmax.f32 %v1312_v45, %v3074_v60  ;;  %v1345_v19 = vmax.f32 %v1343_v59, %v3052_v32 }
 0x42b   : > { %v3076_v3 = vpop.f32.mrf.mxu0 }
 0x42d   : > { %v3078_v48 = vpop.f32.mrf.mxu0 }
 0x42e   : > { %3695 = vst [vmem:[#allocation15_spill] sm:$0xff] %v3078_v48  ;;  %v1315_v36 = vmax.f32 %v1313_v29, %v3078_v48  ;;  %v1338_v48 = vmax.f32 %v1336_v12, %v3024_v8 }
 0x42f   : > { %v3080_v33 = vpop.f32.mrf.mxu0 }
 0x430   : > { %v1340_v10 = vmax.f32 %v1338_v48, %v3032_v16  ;;  %v1347_v48 = vmax.f32 %v1345_v19, %v3060_v17 }
 0x431   : > { %v3082_v26 = vpop.f32.mrf.mxu0 }
 0x432   : > { %3696 = vst [vmem:[#allocation16_spill] sm:$0xff] %v3082_v26  ;;  %v1316_v40 = vmax.f32 %v1314_v55, %v3082_v26  ;;  %v1342_v12 = vmax.f32 %v1340_v10, %v3040_v54 }
 0x433   : > { %v3084_v18 = vpop.f32.mrf.mxu0 }
 0x434   : > { %v1344_v22 = vmax.f32 %v1342_v12, %v3048_v53 }
 0x435   : > { %v3086_v57 = vpop.f32.mrf.mxu0 }
 0x436   : > { %v1317_v56 = vmax.f32 %v1315_v36, %v3086_v57  ;;  %v1346_v2 = vmax.f32 %v1344_v22, %v3056_v51 }
 0x437   : > { %v3088_v5 = vpop.f32.mrf.mxu0 }
 0x439   : > { %v3090_v39 = vpop.f32.mrf.mxu0 }
 0x43a   : > { %v1318_v45 = vmax.f32 %v1316_v40, %v3090_v39 }
 0x43b   : > { %v3092_v15 = vpop.f32.mrf.mxu0 }
 0x43d   : > { %v3094_v38 = vpop.f32.mrf.mxu0 }
 0x43e   : > { %v1319_v29 = vmax.f32 %v1317_v56, %v3094_v38 }
 0x43f   : > { %v3100_v27 = vpop.f32.mrf.mxu0 }
 0x441   : > { %v3104_v6 = vpop.f32.mrf.mxu0 }
 0x442   : > { %v1320_v55 = vmax.f32 %v1318_v45, %v3104_v6 }
 0x443   : > { %v3108_v7 = vpop.f32.mrf.mxu0 }
 0x445   : > { %v3112_v4 = vpop.f32.mrf.mxu0 }
 0x446   : > { %v1321_v36 = vmax.f32 %v1319_v29, %v3112_v4 }
 0x447   : > { %v3116_v20 = vpop.f32.mrf.mxu0 }
 0x449   : > { %v3120_v63 = vpop.f32.mrf.mxu0 }
 0x44a   : > { %v1322_v40 = vmax.f32 %v1320_v55, %v3120_v63 }
 0x44b   : > { %v3124_v49 = vpop.f32.mrf.mxu0 }
 0x44d   : > { %v3128_v61 = vpop.f32.mrf.mxu0 }
 0x44e   : > { %3697 = vst [vmem:[#allocation5_spill] sm:$0xff] %v3128_v61  ;;  %v1323_v56 = vmax.f32 %v1321_v36, %v3128_v61  ;;  %v1349_v36 = vmax.f32 %v1347_v48, %v3068_v13 }
 0x44f   : > { %v3132_v9 = vpop.f32.mrf.mxu0 }
 0x450   : > { %v1351_v10 = vmax.f32 %v1349_v36, %v3076_v3 }
 0x451   : > { %v3138_v58 = vpop.f32.mrf.mxu0 }
 0x452   : > { %3698 = vst [vmem:[#allocation6_spill] sm:$0xff] %v3138_v58  ;;  %v1324_v45 = vmax.f32 %v1322_v40, %v3138_v58  ;;  %v1348_v58 = vmax.f32 %v1346_v2, %v3064_v34 }
 0x453   : > { %v3145_v60 = vpop.f32.mrf.mxu0 }
 0x454   : > { %v1350_v59 = vmax.f32 %v1348_v58, %v3072_v46 }
 0x455   : > { %v3151_v26 = vpop.f32.mrf.mxu0 }
 0x456   : > { %v1325_v29 = vmax.f32 %v1323_v56, %v3151_v26  ;;  %v1353_v56 = vmax.f32 %v1351_v10, %v3084_v18  ;;  %v1352_v12 = vmax.f32 %v1350_v59, %v3080_v33 }
 0x457   : > { %v3157_v14 = vpop.f32.mrf.mxu0 }
 0x458   : > { %v1355_v19 = vmax.f32 %v1353_v56, %v3092_v15  ;;  %v1354_v22 = vmax.f32 %v1352_v12, %v3088_v5 }
 0x459   : > { %v3163_v50 = vpop.f32.mrf.mxu0 }
 0x45a   : > { %v1326_v55 = vmax.f32 %v1324_v45, %v3163_v50  ;;  %v1356_v2 = vmax.f32 %v1354_v22, %v3100_v27 }
 0x45c   : > { %v1327_v16 = vmax.f32 %v1325_v29, %v1326_v55  ;;  %v1357_v55 = vmax.f32 %v1355_v19, %v3108_v7  ;;  %v1358_v58 = vmax.f32 %v1356_v2, %v3116_v20 }
 0x45e   : > { %v1328_v40 = vrot.slane %v1327_v16, 4  ;;  %v1359_v36 = vmax.f32 %v1357_v55, %v3124_v49  ;;  %v1360_v59 = vmax.f32 %v1358_v58, %v3132_v9 }
 0x460   : > { %v1329_v61 = vmax.f32 %v1327_v16, %v1328_v40  ;;  %v3183_v16 = vpop.f32.mrf.mxu0  ;;  %v1361_v40 = vmax.f32 %v1359_v36, %v3145_v60  ;;  %v1362_v56 = vmax.f32 %v1360_v59, %v3157_v14 }
 0x462   : > { %v1330_v45 = vrot.slane %v1329_v61, 2 }
 0x464   : > { %v1331_v29 = vmax.f32 %v1329_v61, %v1330_v45  ;;  %v1363_v61 = vmax.f32 %v1361_v40, %v3183_v16 }
 0x466   : > { %v1332_v48 = vrot.slane %v1331_v29, 1  ;;  %v1364_v22 = vmax.f32 %v1362_v56, %v1363_v61 }
 0x468   : > { %v3187_v10 = vmax.f32 %v1331_v29, %v1332_v48  ;;  %v1365_v58 = vrot.slane %v1364_v22, 4 }
 0x46a   : > { %v1371_v45 = vsub.f32 %v2998_v21, %v3187_v10  ;;  %v1373_v12 = vsub.f32 %v3002_v30, %v3187_v10  ;;  %v1375_v19 = vsub.f32 %v3006_v41, %v3187_v10  ;;  %v1377_v29 = vsub.f32 %v3010_v31, %v3187_v10 }
 0x46b   : > { %v1379_v2 = vsub.f32 %v3014_v52, %v3187_v10  ;;  %v1381_v21 = vsub.f32 %v3018_v28, %v3187_v10  ;;  %v1383_v41 = vsub.f32 %v3022_v35, %v3187_v10  ;;  %v1366_v59 = vmax.f32 %v1364_v22, %v1365_v58  ;;  %v3699_v52 = vld [vmem:[#allocation13_spill] sm:$0xff] }
 0x46c   : > { %v1435_v55 = vmul.f32 1.442695, %v1371_v45  ;;  %v1439_v48 = vmul.f32 1.442695, %v1373_v12  ;;  %v1443_v36 = vmul.f32 1.442695, %v1375_v19  ;;  %v1385_v31 = vsub.f32 %v3026_v1, %v3187_v10 }
 0x46d   : > { %v1447_v30 = vmul.f32 1.442695, %v1377_v29  ;;  %v1451_v40 = vmul.f32 1.442695, %v1379_v2  ;;  %v1455_v61 = vmul.f32 1.442695, %v1381_v21  ;;  %v1387_v56 = vsub.f32 %v3699_v52, %v3187_v10 }
 0x46e   : > { %2095 = vpow2.f32 %v1435_v55  ;;  %v1459_v45 = vmul.f32 1.442695, %v1383_v41  ;;  %v1389_v28 = vsub.f32 %v3034_v47, %v3187_v10  ;;  %v1367_v12 = vrot.slane %v1366_v59, 2  ;;  %v3700_v19 = vld [vmem:[#allocation23_spill] sm:$0xff]  ;;  %v3701_v1 = vld [vmem:[#allocation12_spill] sm:$0xff] }
 0x46f   : > { %2097 = vpow2.f32 %v1439_v48  ;;  %v1391_v35 = vsub.f32 %v3700_v19, %v3187_v10  ;;  %v1463_v29 = vmul.f32 1.442695, %v1385_v31  ;;  %v1393_v22 = vsub.f32 %v3042_v0, %v3187_v10 }
 0x470   : > { %2099 = vpow2.f32 %v1443_v36  ;;  %v1395_v55 = vsub.f32 %v3701_v1, %v3187_v10  ;;  %v1467_v48 = vmul.f32 1.442695, %v1387_v56  ;;  %v1397_v2 = vsub.f32 %v3050_v37, %v3187_v10 }
 0x471   : > { %2101 = vpow2.f32 %v1447_v30  ;;  %v1471_v36 = vmul.f32 1.442695, %v1389_v28  ;;  %v1368_v58 = vmax.f32 %v1366_v59, %v1367_v12  ;;  %v1399_v21 = vsub.f32 %v3054_v43, %v3187_v10 }
 0x472   : > { %2103 = vpow2.f32 %v1451_v40  ;;  %v1475_v30 = vmul.f32 1.442695, %v1391_v35  ;;  %v1415_v0 = vsub.f32 %v3086_v57, %v3187_v10  ;;  %v1479_v40 = vmul.f32 1.442695, %v1393_v22 }
 0x473   : > { %2105 = vpow2.f32 %v1455_v61  ;;  %v1417_v31 = vsub.f32 %v3090_v39, %v3187_v10  ;;  %v1483_v37 = vmul.f32 1.442695, %v1395_v55  ;;  %v1419_v43 = vsub.f32 %v3094_v38, %v3187_v10 }
 0x474   : > { %2107 = vpow2.f32 %v1459_v45  ;;  %v1487_v52 = vmul.f32 1.442695, %v1397_v2  ;;  %v1369_v56 = vrot.slane %v1368_v58, 1  ;;  %v1421_v57 = vsub.f32 %v3104_v6, %v3187_v10  ;;  %v3703_v6 = vld [vmem:[#allocation19_spill] sm:$0xff] }
 0x475   : > { %2109 = vpow2.f32 %v1463_v29  ;;  %v1491_v45 = vmul.f32 1.442695, %v1399_v21  ;;  %v1423_v12 = vsub.f32 %v3112_v4, %v3187_v10  ;;  %v1523_v19 = vmul.f32 1.442695, %v1415_v0  ;;  %v3704_v0 = vld [vmem:[#allocation17_spill] sm:$0xff] }
 0x476   : > { %2111 = vpow2.f32 %v1467_v48  ;;  %v1425_v38 = vsub.f32 %v3120_v63, %v3187_v10  ;;  %v1527_v35 = vmul.f32 1.442695, %v1417_v31  ;;  %v1401_v1 = vsub.f32 %v3703_v6, %v3187_v10 }
 0x477   : > { %2113 = vpow2.f32 %v1471_v36  ;;  %v1531_v55 = vmul.f32 1.442695, %v1419_v43  ;;  %v3250_v48 = vmax.f32 %v1368_v58, %v1369_v56  ;;  %v1403_v4 = vsub.f32 %v3062_v23, %v3187_v10 }
 0x478   : > { %2115 = vpow2.f32 %v1475_v30  ;;  %v1535_v2 = vmul.f32 1.442695, %v1421_v57  ;;  %v1405_v21 = vsub.f32 %v3066_v11, %v3187_v10  ;;  %v1539_v30 = vmul.f32 1.442695, %v1423_v12  ;;  %v3705_v57 = vld [vmem:[#allocation18_spill] sm:$0xff] }
 0x479   : > { %2117 = vpow2.f32 %v1479_v40  ;;  %v1407_v40 = vsub.f32 %v3704_v0, %v3187_v10  ;;  %v1543_v58 = vmul.f32 1.442695, %v1425_v38  ;;  %v1495_v23 = vmul.f32 1.442695, %v1401_v1 }
 0x47a   : > { %2119 = vpow2.f32 %v1483_v37  ;;  %v1499_v43 = vmul.f32 1.442695, %v1403_v4 }
 0x47b   : > { %v3220_v47 = vpop.eup %2095  ;;  %2121 = vpow2.f32 %v1487_v52  ;;  %v1374_v52 = vsub.f32 %v3004_v44, %v3250_v48  ;;  %v1507_v12 = vmul.f32 1.442695, %v1407_v40 }
 0x47c   : > { %v3224_v41 = vpop.eup %2097  ;;  %2123 = vpow2.f32 %v1491_v45  ;;  %v1409_v45 = vsub.f32 %v3705_v57, %v3187_v10 }
 0x47d   : > { %3702 = vst [vmem:[#allocation7_spill] sm:$0xff] %v3224_v41  ;;  %v1563_v59 = vadd.f32 %v3224_v41, %v3220_v47  ;;  %v3232_v61 = vpop.eup %2099  ;;  %2125 = vpow2.f32 %v1523_v19 }
 0x47e   : > { %v3239_v28 = vpop.eup %2101  ;;  %2127 = vpow2.f32 %v1527_v35  ;;  %v3706_v35 = vld [vmem:[#allocation15_spill] sm:$0xff] }
 0x47f   : > { %v1564_v39 = vadd.f32 %v3232_v61, %v1563_v59  ;;  %v3246_v22 = vpop.eup %2103  ;;  %2129 = vpow2.f32 %v1531_v55  ;;  %v1372_v59 = vsub.f32 %v3000_v24, %v3250_v48  ;;  %v1376_v24 = vsub.f32 %v3008_v25, %v3250_v48  ;;  %v3707_v55 = vld [vmem:[#allocation21_spill] sm:$0xff]  ;;  %v3708_v25 = vld [vmem:[#allocation16_spill] sm:$0xff] }
 0x480   : > { %v3255_v36 = vpop.eup %2105  ;;  %2131 = vpow2.f32 %v1535_v2  ;;  %v1378_v4 = vsub.f32 %v3707_v55, %v3250_v48  ;;  %v1441_v2 = vmul.f32 1.442695, %v1374_v52 }
 0x481   : > { %v1565_v29 = vadd.f32 %v3239_v28, %v1564_v39  ;;  %v3262_v37 = vpop.eup %2107  ;;  %v1503_v39 = vmul.f32 1.442695, %v1405_v21  ;;  %2133 = vpow2.f32 %v1539_v30  ;;  %v1437_v44 = vmul.f32 1.442695, %v1372_v59 }
 0x482   : > { %v3269_v56 = vpop.eup %2109  ;;  %2135 = vpow2.f32 %v1543_v58  ;;  %v1413_v21 = vsub.f32 %v3708_v25, %v3187_v10  ;;  %v1511_v30 = vmul.f32 1.442695, %v1409_v45  ;;  %v1380_v58 = vsub.f32 %v3016_v42, %v3250_v48 }
 0x483   : > { %v1566_v63 = vadd.f32 %v3246_v22, %v1565_v29  ;;  %v3276_v38 = vpop.eup %2111  ;;  %v1411_v29 = vsub.f32 %v3706_v35, %v3187_v10  ;;  %2137 = vpow2.f32 %v1495_v23  ;;  %v1384_v45 = vsub.f32 %v3024_v8, %v3250_v48 }
 0x484   : > { %v3280_v6 = vpop.eup %2113  ;;  %2139 = vpow2.f32 %v1499_v43  ;;  %v3709_v43 = vld [vmem:[#allocation10_spill] sm:$0xff]  ;;  %v1519_v42 = vmul.f32 1.442695, %v1413_v21  ;;  %v1453_v55 = vmul.f32 1.442695, %v1380_v58  ;;  %v1396_v8 = vsub.f32 %v3048_v53, %v3250_v48 }
 0x485   : > { %v1567_v31 = vadd.f32 %v3255_v36, %v1566_v63  ;;  %v3285_v63 = vpop.eup %2115  ;;  %2141 = vpow2.f32 %v1503_v39  ;;  %v1515_v59 = vmul.f32 1.442695, %v1411_v29  ;;  %v1449_v39 = vmul.f32 1.442695, %v1378_v4 }
 0x486   : > { %v3289_v0 = vpop.eup %2117  ;;  %2143 = vpow2.f32 %v1507_v12  ;;  %v1398_v4 = vsub.f32 %v3052_v32, %v3250_v48  ;;  %v1402_v53 = vsub.f32 %v3060_v17, %v3250_v48 }
 0x487   : > { %v1568_v11 = vadd.f32 %v3262_v37, %v1567_v31  ;;  %v1445_v31 = vmul.f32 1.442695, %v1376_v24  ;;  %v3294_v23 = vpop.eup %2119  ;;  %2145 = vpow2.f32 %v1437_v44  ;;  %v3711_v44 = vld [vmem:[#allocation14_spill] sm:$0xff] }
 0x488   : > { %v3298_v52 = vpop.eup %2121  ;;  %2147 = vpow2.f32 %v1441_v2 }
 0x489   : > { %v1569_v19 = vadd.f32 %v3269_v56, %v1568_v11  ;;  %v1382_v11 = vsub.f32 %v3709_v43, %v3250_v48  ;;  %v3303_v12 = vpop.eup %2123  ;;  %2149 = vpow2.f32 %v1511_v30 }
 0x48a   : > { %v3307_v35 = vpop.eup %2125  ;;  %2151 = vpow2.f32 %v1445_v31 }
 0x48b   : > { %v1570_v1 = vadd.f32 %v3276_v38, %v1569_v19  ;;  %v3710_v19 = vld [vmem:[#allocation11_spill] sm:$0xff]  ;;  %v3312_v25 = vpop.eup %2127  ;;  %2153 = vpow2.f32 %v1515_v59  ;;  %v1457_v2 = vmul.f32 1.442695, %v1382_v11  ;;  %v1400_v59 = vsub.f32 %v3056_v51, %v3250_v48 }
 0x48c   : > { %v1386_v24 = vsub.f32 %v3710_v19, %v3250_v48  ;;  %v3318_v21 = vpop.eup %2129  ;;  %2155 = vpow2.f32 %v1449_v39  ;;  %v1485_v51 = vmul.f32 1.442695, %v1396_v8 }
 0x48d   : > { %v1571_v40 = vadd.f32 %v3280_v6, %v1570_v1  ;;  %v1388_v1 = vsub.f32 %v3711_v44, %v3250_v48  ;;  %v3323_v58 = vpop.eup %2131  ;;  %2157 = vpow2.f32 %v1519_v42  ;;  %v3712_v42 = vld [vmem:[#allocation22_spill] sm:$0xff] }
 0x48e   : > { %v1465_v32 = vmul.f32 1.442695, %v1386_v24  ;;  %v3329_v43 = vpop.eup %2133  ;;  %2159 = vpow2.f32 %v1453_v55  ;;  %v1390_v19 = vsub.f32 %v3712_v42, %v3250_v48  ;;  %v1489_v24 = vmul.f32 1.442695, %v1398_v4 }
 0x48f   : > { %v1572_v57 = vadd.f32 %v3285_v63, %v1571_v40  ;;  %v1461_v40 = vmul.f32 1.442695, %v1384_v45  ;;  %v3334_v39 = vpop.eup %2135  ;;  %2161 = vpow2.f32 %v1457_v2  ;;  %v1392_v55 = vsub.f32 %v3040_v54, %v3250_v48 }
 0x490   : > { %v1394_v2 = vsub.f32 %v3044_v62, %v3250_v48  ;;  %v1473_v45 = vmul.f32 1.442695, %v1390_v19  ;;  %v3718_v19 = vld [vmem:[#allocation6_spill] sm:$0xff] }
 0x491   : > { %v1573_v29 = vadd.f32 %v3289_v0, %v1572_v57  ;;  %v1469_v57 = vmul.f32 1.442695, %v1388_v1  ;;  %2163 = vpow2.f32 %v1461_v40  ;;  %v1497_v40 = vmul.f32 1.442695, %v1402_v53 }
 0x492   : > { %2165 = vpow2.f32 %v1465_v32  ;;  %v1481_v53 = vmul.f32 1.442695, %v1394_v2 }
 0x493   : > { %v1574_v30 = vadd.f32 %v3294_v23, %v1573_v29  ;;  %v3338_v29 = vpop.eup %2137  ;;  %2167 = vpow2.f32 %v1469_v57 }
 0x494   : > { %v3343_v1 = vpop.eup %2139  ;;  %2169 = vpow2.f32 %v1485_v51 }
 0x495   : > { %v1575_v11 = vadd.f32 %v3298_v52, %v1574_v30  ;;  %3713 = vst [vmem:[#allocation13_spill] sm:$0xff] %v3343_v1  ;;  %v1493_v30 = vmul.f32 1.442695, %v1400_v59  ;;  %v3347_v31 = vpop.eup %2141  ;;  %2171 = vpow2.f32 %v1489_v24  ;;  %v3716_v59 = vld [vmem:[#allocation5_spill] sm:$0xff]  ;;  %v1429_v24 = vsub.f32 %v3718_v19, %v3187_v10 }
 0x496   : > { %3714 = vst [vmem:[#allocation23_spill] sm:$0xff] %v3347_v31  ;;  %v3352_v4 = vpop.eup %2143  ;;  %v1427_v32 = vsub.f32 %v3716_v59, %v3187_v10  ;;  %v1424_v59 = vsub.f32 %v3116_v20, %v3250_v48 }
 0x497   : > { %v1576_v17 = vadd.f32 %v3303_v12, %v1575_v11  ;;  %3715 = vst [vmem:[#allocation12_spill] sm:$0xff] %v3352_v4  ;;  %v3354_v11 = vpop.eup %2145  ;;  %2173 = vpow2.f32 %v1493_v30 }
 0x498   : > { %v3357_v54 = vpop.eup %2147  ;;  %2175 = vpow2.f32 %v1497_v40  ;;  %v1547_v40 = vmul.f32 1.442695, %v1427_v32  ;;  %v1433_v32 = vsub.f32 %v3163_v50, %v3187_v10 }
 0x499   : > { %v1577_v8 = vadd.f32 %v3338_v29, %v1576_v17  ;;  %v1477_v17 = vmul.f32 1.442695, %v1392_v55  ;;  %v3361_v44 = vpop.eup %2149  ;;  %v1600_v57 = vadd.f32 %v3357_v54, %v3354_v11  ;;  %v1431_v55 = vsub.f32 %v3151_v26, %v3187_v10 }
 0x49a   : > { %3717 = vst [vmem:[#allocation19_spill] sm:$0xff] %v3361_v44  ;;  %v3366_v51 = vpop.eup %2151  ;;  %2177 = vpow2.f32 %v1473_v45  ;;  %v1406_v10 = vsub.f32 %v3068_v13, %v3250_v48 }
 0x49b   : > { %v1578_v42 = vadd.f32 %v3343_v1, %v1577_v8  ;;  %v3370_v8 = vpop.eup %2153  ;;  %2179 = vpow2.f32 %v1477_v17  ;;  %v1426_v1 = vsub.f32 %v3124_v49, %v3250_v48  ;;  %v1555_v20 = vmul.f32 1.442695, %v1431_v55 }
 0x49c   : > { %v3376_v2 = vpop.eup %2155  ;;  %2181 = vpow2.f32 %v1481_v53  ;;  %v1404_v49 = vsub.f32 %v3064_v34, %v3250_v48  ;;  %v1541_v53 = vmul.f32 1.442695, %v1424_v59 }
 0x49d   : > { %v1579_v62 = vadd.f32 %v3347_v31, %v1578_v42  ;;  %v1601_v42 = vadd.f32 %v3366_v51, %v1600_v57  ;;  %v3380_v31 = vpop.eup %2157  ;;  %2183 = vpow2.f32 %v1547_v40  ;;  %v1408_v40 = vsub.f32 %v3072_v46, %v3250_v48 }
 0x49e   : > { %3719 = vst [vmem:[#allocation17_spill] sm:$0xff] %v3380_v31  ;;  %v3386_v45 = vpop.eup %2159 }
 0x49f   : > { %v1580_v30 = vadd.f32 %v3352_v4, %v1579_v62  ;;  %v1602_v26 = vadd.f32 %v3376_v2, %v1601_v42  ;;  %v1551_v62 = vmul.f32 1.442695, %v1429_v24  ;;  %v3388_v57 = vpop.eup %2161 }
 0x4a1   : > { %v1581_v19 = vadd.f32 %v3361_v44, %v1580_v30  ;;  %v1603_v4 = vadd.f32 %v3386_v45, %v1602_v26  ;;  %v3394_v30 = vpop.eup %2163  ;;  %v1545_v44 = vmul.f32 1.442695, %v1426_v1  ;;  %2185 = vpow2.f32 %v1551_v62 }
 0x4a2   : > { %v3398_v42 = vpop.eup %2165  ;;  %2187 = vpow2.f32 %v1555_v20  ;;  %v1501_v62 = vmul.f32 1.442695, %v1404_v49  ;;  %v1505_v20 = vmul.f32 1.442695, %v1406_v10  ;;  %v1509_v49 = vmul.f32 1.442695, %v1408_v40 }
 0x4a3   : > { %v1582_v17 = vadd.f32 %v3370_v8, %v1581_v19  ;;  %v1604_v41 = vadd.f32 %v3388_v57, %v1603_v4  ;;  %v3402_v50 = vpop.eup %2167  ;;  %v1559_v19 = vmul.f32 1.442695, %v1433_v32  ;;  %2189 = vpow2.f32 %v1541_v53 }
 0x4a4   : > { %v2170_v55 = vpop.eup %2169  ;;  %2191 = vpow2.f32 %v1545_v44  ;;  %v1410_v32 = vsub.f32 %v3076_v3, %v3250_v48  ;;  %v1412_v44 = vsub.f32 %v3080_v33, %v3250_v48 }
 0x4a5   : > { %v1583_v24 = vadd.f32 %v3380_v31, %v1582_v17  ;;  %v1605_v59 = vadd.f32 %v3394_v30, %v1604_v41  ;;  %v2172_v26 = vpop.eup %2171  ;;  %2193 = vpow2.f32 %v1559_v19  ;;  %v1416_v31 = vsub.f32 %v3088_v5, %v3250_v48 }
 0x4a6   : > { %v3410_v1 = vpop.eup %2173  ;;  %2195 = vpow2.f32 %v1501_v62  ;;  %v1650_v19 = vpack.c.bf16 %v2172_v26, %v2170_v55  ;;  %v1513_v40 = vmul.f32 1.442695, %v1410_v32  ;;  %v1434_v62 = vsub.f32 %v3183_v16, %v3250_v48 }
 0x4a7   : > { %v1584_v34 = vadd.f32 %v3307_v35, %v1583_v24  ;;  %v1606_v13 = vadd.f32 %v3398_v42, %v1605_v59  ;;  %v3414_v17 = vpop.eup %2175  ;;  %2197 = vpow2.f32 %v1505_v20  ;;  %v1418_v32 = vsub.f32 %v3092_v15, %v3250_v48 }
 0x4a8   : > { %v1652_v53 = vpack.c.bf16 %v3414_v17, %v3410_v1  ;;  %v2178_v24 = vpop.eup %2177  ;;  %2199 = vpow2.f32 %v1509_v49  ;;  %v1428_v16 = vsub.f32 %v3132_v9, %v3250_v48  ;;  %v1430_v15 = vsub.f32 %v3145_v60, %v3250_v48 }
 0x4a9   : > { %v1585_v4 = vadd.f32 %v3312_v25, %v1584_v34  ;;  %v1607_v46 = vadd.f32 %v3402_v50, %v1606_v13  ;;  %v1651_v34 = vpack.c.bf16 %v3338_v29, %v3303_v12  ;;  %v2180_v59 = vpop.eup %2179  ;;  %v1414_v13 = vsub.f32 %v3084_v18, %v3250_v48 }
 0x4aa   : > { %1669 = vmatprep.subr.bf16.mxu1 %v1652_v53  ;;  %v1432_v29 = vsub.f32 %v3157_v14, %v3250_v48  ;;  %v1649_v18 = vpack.c.bf16 %v3298_v52, %v3294_v23  ;;  %v1420_v14 = vsub.f32 %v3100_v27, %v3250_v48  ;;  %2201 = vpow2.f32 %v1513_v40 }
 0x4ab   : > { %v1586_v41 = vadd.f32 %v3318_v21, %v1585_v4  ;;  %v1608_v10 = vadd.f32 %v2178_v24, %v1607_v46  ;;  %v2182_v4 = vpop.eup %2181  ;;  %1670 = vmatpush1.bf16.msra.mxu1 %v1651_v34  ;;  %v1521_v20 = vmul.f32 1.442695, %v1414_v13  ;;  %v1525_v52 = vmul.f32 1.442695, %v1416_v31 }
 0x4ac   : > { %1671 = vmatprep.subr.bf16.mxu1 %v1650_v19  ;;  %v1648_v53 = vpack.c.bf16 %v2182_v4, %v2180_v59  ;;  %v3439_v34 = vpop.eup %2183  ;;  %v1561_v27 = vmul.f32 1.442695, %v1434_v62  ;;  %v1647_v9 = vpack.c.bf16 %v3289_v0, %v3285_v63  ;;  %v1646_v31 = vpack.c.bf16 %v2178_v24, %v3402_v50 }
 0x4ad   : > { %v1587_v3 = vadd.f32 %v3323_v58, %v1586_v41  ;;  %v1609_v12 = vadd.f32 %v2180_v59, %v1608_v10  ;;  %v1517_v41 = vmul.f32 1.442695, %v1412_v44  ;;  %v1422_v13 = vsub.f32 %v3108_v7, %v3250_v48 }
 0x4ae   : > { %v3447_v44 = vpop.eup %2185  ;;  %v1529_v60 = vmul.f32 1.442695, %v1418_v32  ;;  %v1549_v50 = vmul.f32 1.442695, %v1428_v16  ;;  %v1553_v24 = vmul.f32 1.442695, %v1430_v15  ;;  %v1645_v7 = vpack.c.bf16 %v3280_v6, %v3276_v38 }
 0x4af   : > { %v1588_v33 = vadd.f32 %v3329_v43, %v1587_v3  ;;  %v1610_v5 = vadd.f32 %v2182_v4, %v1609_v12  ;;  %1672 = vmatpush1.bf16.msra.mxu1 %v1649_v18  ;;  %v3450_v59 = vpop.eup %2187  ;;  %v1557_v3 = vmul.f32 1.442695, %v1432_v29  ;;  %2203 = vpow2.f32 %v1517_v41 }
 0x4b0   : > { %1673 = vmatprep.subr.bf16.mxu1 %v1648_v53  ;;  %v3456_v10 = vpop.eup %2189  ;;  %2205 = vpow2.f32 %v1521_v20  ;;  %v1644_v29 = vpack.c.bf16 %v3398_v42, %v3394_v30  ;;  %v1537_v62 = vmul.f32 1.442695, %v1422_v13  ;;  %v1643_v38 = vpack.c.bf16 %v3269_v56, %v3262_v37 }
 0x4b1   : > { %v1589_v46 = vadd.f32 %v3334_v39, %v1588_v33  ;;  %v1611_v49 = vadd.f32 %v2170_v55, %v1610_v5  ;;  %v3460_v55 = vpop.eup %2191  ;;  %v1533_v33 = vmul.f32 1.442695, %v1420_v14  ;;  %2207 = vpow2.f32 %v1525_v52 }
 0x4b2   : > { %v1664_v0 = vpack.c.bf16 %v3460_v55, %v3456_v10  ;;  %2209 = vpow2.f32 %v1557_v3  ;;  %v1642_v30 = vpack.c.bf16 %v3388_v57, %v3386_v45  ;;  %v1641_v5 = vpack.c.bf16 %v3255_v36, %v3246_v22 }
 0x4b3   : > { %v1590_v23 = vadd.f32 %v3439_v34, %v1589_v46  ;;  %v1612_v4 = vadd.f32 %v2172_v26, %v1611_v49  ;;  %1674 = vmatpush1.bf16.msra.mxu1 %v1647_v9  ;;  %v2194_v26 = vpop.eup %2193  ;;  %2211 = vpow2.f32 %v1561_v27  ;;  %v1640_v32 = vpack.c.bf16 %v3376_v2, %v3366_v51  ;;  %v3720_v2 = vld [vmem:[#allocation7_spill] sm:$0xff] }
 0x4b4   : > { %1675 = vmatprep.subr.bf16.mxu1 %v1646_v31  ;;  %2213 = vpow2.f32 %v1529_v60  ;;  %v1639_v45 = vpack.c.bf16 %v3239_v28, %v3232_v61  ;;  %v1637_v49 = vpack.c.bf16 %v3720_v2, %v3220_v47  ;;  %v1665_v31 = vpack.c.bf16 %v3447_v44, %v3439_v34 }
 0x4b5   : > { %v1591_v19 = vadd.f32 %v3447_v44, %v1590_v23  ;;  %v1613_v63 = vadd.f32 %v3410_v1, %v1612_v4  ;;  %v3475_v1 = vpop.eup %2195  ;;  %2215 = vpow2.f32 %v1533_v33  ;;  %v1638_v23 = vpack.c.bf16 %v3357_v54, %v3354_v11 }
 0x4b6   : > { %v3478_v18 = vpop.eup %2197  ;;  %2217 = vpow2.f32 %v1549_v50  ;;  %v3722_v34 = vpack.c.bf16 %v3323_v58, %v3318_v21  ;;  %v3726_v50 = vld [vmem:[#allocation19_spill] sm:$0xff]  ;;  %v3727_v58 = vld [vmem:[#allocation13_spill] sm:$0xff] }
 0x4b7   : > { %v1592_v40 = vadd.f32 %v3450_v59, %v1591_v19  ;;  %v1614_v12 = vadd.f32 %v3414_v17, %v1613_v63  ;;  %1676 = vmatpush1.bf16.msra.mxu1 %v1645_v7  ;;  %2219 = vpow2.f32 %v1553_v24  ;;  %v2200_v42 = vpop.eup %2199  ;;  %v1667_v19 = vpack.c.bf16 %v2194_v26, %v3450_v59  ;;  %v3728_v7 = vld [vmem:[#allocation23_spill] sm:$0xff] }
 0x4b8   : > { %1677 = vmatprep.subr.bf16.mxu1 %v1644_v29  ;;  %2221 = vpow2.f32 %v1537_v62  ;;  %v2202_v46 = vpop.eup %2201  ;;  %v3721_v59 = vpack.c.bf16 %v3334_v39, %v3329_v43  ;;  %v3725_v39 = vld [vmem:[#allocation12_spill] sm:$0xff]  ;;  %v1654_v21 = vpack.c.bf16 %v3478_v18, %v3475_v1  ;;  %v1729_v29 = vld [vmem:[%s3580_s3] sm:$0xf] }
 0x4b9   : > { %v3470_v48 = vadd.f32 %v2194_v26, %v1592_v40  ;;  %v1615_v41 = vadd.f32 %v3475_v1, %v1614_v12  ;;  %v1656_v43 = vpack.c.bf16 %v2202_v46, %v2200_v42  ;;  %v1655_v24 = vpack.c.bf16 %v3726_v50, %v3725_v39  ;;  %1732 = vperm.xlu0 %1957, %v1729_v29  }
 0x4ba   : > { %v1653_v12 = vpack.c.bf16 %v3728_v7, %v3727_v58 }
 0x4bb   : > { %v1616_v6 = vadd.f32 %v3478_v18, %v1615_v41  ;;  %1678 = vmatpush1.bf16.msra.mxu1 %v1643_v38  ;;  %v1594_v62 = vrot.slane %v3470_v48, 4 }
 0x4bc   : > { %1679 = vmatprep.subr.bf16.mxu1 %v1642_v30  ;;  %v2204_v37 = vpop.eup %2203 }
 0x4bd   : > { %v1617_v17 = vadd.f32 %v2200_v42, %v1616_v6  ;;  %v2206_v56 = vpop.eup %2205  ;;  %v1595_v41 = vadd.f32 %v1594_v62, %v3470_v48 }
 0x4be   : > { %v2208_v16 = vpop.eup %2207  ;;  %v1658_v44 = vpack.c.bf16 %v2206_v56, %v2204_v37 }
 0x4bf   : > { %v1618_v53 = vadd.f32 %v2202_v46, %v1617_v17  ;;  %1680 = vmatpush1.bf16.msra.mxu1 %v1641_v5  ;;  %v2210_v57 = vpop.eup %2209  ;;  %v1596_v38 = vrot.slane %v1595_v41, 2 }
 0x4c0   : > { %1681 = vmatprep.subr.bf16.mxu1 %v1640_v32  ;;  %v2212_v52 = vpop.eup %2211 }
 0x4c1   : > { %v1619_v14 = vadd.f32 %v2204_v37, %v1618_v53  ;;  %v2214_v22 = vpop.eup %2213  ;;  %v1668_v27 = vpack.c.bf16 %v2212_v52, %v2210_v57  ;;  %v1597_v30 = vadd.f32 %v1596_v38, %v1595_v41 }
 0x4c2   : > { %v2216_v51 = vpop.eup %2215  ;;  %v1660_v26 = vpack.c.bf16 %v2214_v22, %v2208_v16 }
 0x4c3   : > { %v1620_v20 = vadd.f32 %v2206_v56, %v1619_v14  ;;  %1682 = vmatpush1.bf16.msra.mxu1 %v1639_v45  ;;  %v2218_v15 = vpop.eup %2217  ;;  %v1598_v17 = vrot.slane %v1597_v30, 1 }
 0x4c4   : > { %1683 = vmatprep.subr.bf16.mxu1 %v1638_v23  ;;  %v2220_v9 = vpop.eup %2219 }
 0x4c5   : > { %v1621_v36 = vadd.f32 %v2208_v16, %v1620_v20  ;;  %v2222_v28 = vpop.eup %2221  ;;  %v1666_v54 = vpack.c.bf16 %v2220_v9, %v2218_v15  ;;  %v1599_v5 = vadd.f32 %v1598_v17, %v1597_v30  ;;  %v3731_v20 = vld [vmem:[#allocation20_spill] sm:$0xff] }
 0x4c6   : > { %v1662_v33 = vpack.c.bf16 %v2222_v28, %v2216_v51  ;;  %v1010_v23 = vpack.c.bf16 %v3731_v20, %v3731_v20 }
 0x4c7   : > { %v1622_v3 = vadd.f32 %v2214_v22, %v1621_v36  ;;  %1684 = vmatpush1.bf16.msra.mxu1 %v1637_v49  ;;  %2223 = vrcp.f32 %v1599_v5 }
 0x4c8   : > { %1685 = vmatprep.subr.bf16.mxu1 %v1668_v27  ;;  %v1728_v27 = vld [vmem:[%s3579_s2] sm:$0x3] }
 0x4c9   : > { %v1623_v61 = vadd.f32 %v2216_v51, %v1622_v3  ;;  %v3732_v51 = vld [vmem:[#allocation9_spill] sm:$0xff] }
 0x4ca   : > { %v1011_v2 = vpack.c.bf16 %v3732_v51, %v3732_v51 }
 0x4cb   : > { %v1624_v11 = vadd.f32 %v2222_v28, %v1623_v61  ;;  %1686 = vmatpush2.bf16.msra.mxu1 %v1667_v19 }
 0x4cc   : > { %1687 = vmatprep.subr.bf16.mxu1 %v1666_v54 }
 0x4cd   : > { %v1625_v4 = vadd.f32 %v3456_v10, %v1624_v11  ;;  %v3723_v10 = vpack.c.bf16 %v3312_v25, %v3307_v35  ;;  %v3729_v35 = vld [vmem:[#allocation8_spill] sm:$0xff] }
 0x4ce   : > { %v1016_v25 = vpack.c.bf16 %v3729_v35, %v3729_v35 }
 0x4cf   : > { %v1626_v47 = vadd.f32 %v3460_v55, %v1625_v4  ;;  %1688 = vmatpush2.bf16.msra.mxu1 %v1665_v31  ;;  %v3724_v55 = vld [vmem:[#allocation17_spill] sm:$0xff] }
 0x4d0   : > { %1689 = vmatprep.subr.bf16.mxu1 %v1664_v0  ;;  %v1657_v0 = vpack.c.bf16 %v3724_v55, %v3370_v8  ;;  %v3730_v8 = vmov 0  }
 0x4d1   : > { %v1627_v13 = vadd.f32 %v2218_v15, %v1626_v47 }
 0x4d3   : > { %v1628_v60 = vadd.f32 %v2220_v9, %v1627_v13  ;;  %1690 = vmatpush2.bf16.msra.mxu1 %v3721_v59 }
 0x4d4   : > { %1691 = vmatprep.subr.bf16.mxu1 %v1662_v33  ;;  %v2224_v32 = vpop.eup %2223 }
 0x4d5   : > { %v1629_v40 = vadd.f32 %v2210_v57, %v1628_v60 }
 0x4d7   : > { %v1630_v63 = vadd.f32 %v2212_v52, %v1629_v40  ;;  %1692 = vmatpush2.bf16.msra.mxu1 %v3722_v34 }
 0x4d8   : > { %1693 = vmatprep.subr.bf16.mxu1 %v1660_v26 }
 0x4d9   : > { %v1631_v1 = vrot.slane %v1630_v63, 4 }
 0x4db   : > { %1694 = vmatpush2.bf16.msra.mxu1 %v3723_v10  ;;  %v1632_v18 = vadd.f32 %v1631_v1, %v1630_v63 }
 0x4dc   : > { %1695 = vmatprep.subr.bf16.mxu1 %v1658_v44 }
 0x4dd   : > { %v1633_v6 = vrot.slane %v1632_v18, 2 }
 0x4df   : > { %1696 = vmatpush2.bf16.msra.mxu1 %v1657_v0  ;;  %v1634_v42 = vadd.f32 %v1633_v6, %v1632_v18 }
 0x4e0   : > { %1697 = vmatprep.subr.bf16.mxu1 %v1656_v43 }
 0x4e1   : > { %v1635_v46 = vrot.slane %v1634_v42, 1 }
 0x4e3   : > { %1698 = vmatpush2.bf16.msra.mxu1 %v1655_v24  ;;  %v1636_v53 = vadd.f32 %v1635_v46, %v1634_v42 }
 0x4e4   : > { %1699 = vmatprep.subr.bf16.mxu1 %v1654_v21 }
 0x4e5   : > { %2225 = vrcp.f32 %v1636_v53 }
 0x4e7   : > { %1700 = vmatpush2.bf16.msra.mxu1 %v1653_v12 }
 0x4ea   : > { %1702 = vmatmul.mubr.bf16.vlgmr.msra.gmra.mxu1 %v1016_v25 }
 0x4eb   : > { %1771 = vmatprep.mubr.bf16.mxu1 %v3730_v8 }
 0x4f2   : > { %v2226_v14 = vpop.eup %2225 }
 0x534   : > { %v1733_v61 = vpop.permute.xlu0 %1732 }
 0x5aa   : > { %v1703_v37 = vpop.f32.mrf.mxu1 }
 0x5ab   : > { %v1712_v56 = vmul.f32 %v2224_v32, %v1703_v37 }
 0x5ac   : > { %v1705_v16 = vpop.f32.mrf.mxu1 }
 0x5ad   : > { %v1714_v45 = vpack.c.bf16 %v1712_v56, %v1712_v56  ;;  %v1713_v57 = vmul.f32 %v2226_v14, %v1705_v16 }
 0x5ae   : > { %v1707_v48 = vpop.f32.mrf.mxu1 }
 0x5af   : > { %v1718_v52 = vrot.slane %v1714_v45, 4  ;;  %v1715_v22 = vpack.c.bf16 %v1713_v57, %v1713_v57 }
 0x5b0   : > { %v1708_v36 = vpop.f32.mrf.mxu1 }
 0x5b1   : > { %v1719_v49 = vrot.slane %v1715_v22, 4  ;;  %v1722_v15 = vsel %vm235_vm1, %v1010_v23, %v1718_v52 }
 0x5b3   : > { %v1726_v3 = vsel %vm235_vm1, %v1011_v2, %v1719_v49 }
 0x5b4   : > { %1753 = vmatprep.subr.bf16.mxu1 %v1726_v3 }
 0x5b5   : > { %1754 = vmatpush1.bf16.msra.mxu1 %v1722_v15 }
 0x5b8   : > { %1908 = vmatmul.mubr.msk.bf16.vlgmr.msra.gmra.mxu1 %vm1735_vm4, %v1728_v27 }
 0x678   : > { %v1773_v9 = vpop.f32.mrf.mxu1 }
 0x679   : > { %v1774_v19 = vadd.f32 %v1773_v9, %v1733_v61 }
 0x67a   : > { %v1775_v28 = vpop.f32.mrf.mxu1 }
 0x67b   : > { %v1776_v11 = vadd.f32 %v1775_v28, %v1733_v61 }
 0x67c   : > { %v1777_v54 = vpop.f32.mrf.mxu1 }
 0x67d   : > { %v1782_v4 = vcombine.low %v1774_v19, %v1776_v11 }
 0x67e   : > { %v1778_v31 = vpop.f32.mrf.mxu1 }
 0x67f   : > { %1784 = vst [vmem:[%s190_s28] sm:$0xff] %v1782_v4 }
 0x680   : > { %2240 = shalt.err (!%p2237_p3)
}
 0x681   : > { %s2241_s11 = scalar_lea.hbm %s3542_s6, 128  ;;  %s2245_s14 = scalar_lea.hbm %s3581_s4, 256 }
 0x682   : > { %p2242_p4 = scmp.ne.s32.totalorder %s3542_s6, %s2241_s11  ;;  %p2246_p9 = scmp.lt.s32.totalorder %s3542_s6, %s3581_s4 }
 0x683   : > { %p2247_p10 = scmp.lt.s32.totalorder %s2245_s14, %s2241_s11 }
 0x684   : > { %p2243_p7 = pnand %p2242_p4, %p2355_p5 }
 0x685   : > { %p2248_p11 = por %p2247_p10, %p2246_p9 }
 0x686   : > { %p2244_p8 = pneg %p2243_p7 }
 0x688   : > { %p2249_p12 = pnand %p2248_p11, %p2244_p8 }
 0x68a   : > { %2252 = shalt.err (!%p2249_p12)
}
 0x68b   : > { %1916 = dma.vmem_to_hbm [thread:$0]  (%p2355_p5), %s1801_s29, 128, %s3542_s6, %s1786_s7  }
 0x68c PF: > { %p1922_p13 = scmp.ge.s32.totalorder %s2287_s18, 2  ;;  %s1812_s23 = sand.u32 1, %s2275_s15  }
 0x68d   : > { %s1813_s27 = scalar_lea.sflag [#allocation3], %s1812_s23 }
 0x68e   : > { %p1919_p0 = pnand %p1922_p13, %p2359_p6 }
 0x690   : > { %p1920_p1 = pneg %p1919_p0 }
 0x692   : > { %2270 = dma.done.wait (%p1920_p1), %s1813_s27, 128  }
 0x693   : > { %2272 = vsyncadd (%p1920_p1), %s1813_s27, 4294967168  ;;  %p14_p2 = scmp.ge.s32.totalorder %s2342_s21, 4   ;;  %s3733_s15 = smov %s2279_s16 }
 0x694   : > { %s3734_s16 = smov %s2283_s17  ;;  %s3735_s17 = smov %s2353_s24 }
 0x695   : > { %s3736_s18 = smov %s2342_s21  ;;  %16 = sbr.rel (!%p14_p2) target bundleno = 3 (0x3), region = 71 }
 0x69a   :  { %1818 = vsyncpa [#allocation3], 1 }
 0x69b   :  { %1820 = vsyncpa [#allocation3 + $0x1], 1 }

</bundles_post_ra>
